<compile_context>
chip_gen: v7x
topology: tpu7x:2x2x1
jax: 0.10.0
libtpu: 0.0.40
codegen_flags: <defaults>
</compile_context>

<pallas_src>
import jax
import jax.numpy as jnp
from jax.experimental import pallas as pl
from jax.experimental.pallas import tpu as pltpu

LANE = 128


def _round_up(x, m):
    return ((x + m - 1) // m) * m


def _pad_axis(x, axis, target):
    pad = target - x.shape[axis]
    if pad <= 0:
        return x
    widths = [(0, 0)] * x.ndim
    widths[axis] = (0, pad)
    return jnp.pad(x, widths)


# --------------------------------------------------------------------------- #
# Kernel
# --------------------------------------------------------------------------- #
def icm_kernel(
    xs_ref,                                  # (2, TB, obs_dim) f32  stacked (obs ; next_obs)
    act_ref,                                 # (TB, A) f32
    we1_ref, we2_ref,                        # obs_encoder weights   (bf16, lane-padded)
    wia_ref, wib_ref, wi2_ref,               # inverse model weights (first layer split)
    wfa_ref, wfb_ref, wf2_ref,               # forward model weights (first layer split)
    be1_ref, be2_ref, bi1_ref, bi2_ref, bf1_ref, bf2_ref,   # biases (f32, lane-padded)
    out_ref,                                 # (TB, Ap + 2*Hp) bf16  [pred_action | pred_next | next_enc]
):
    tb = xs_ref.shape[1]
    obs_dim = xs_ref.shape[2]
    hp = we2_ref.shape[1]                    # padded hidden width
    ap = wi2_ref.shape[1]                    # padded action width

    # Stacked obs/next_obs -> (2*TB, obs_dim). TB % 8 == 0, so collapsing the
    # two leading dims is a free view; cast to bf16 on the VPU here (no
    # separate HBM cast pass in the wrapper).
    x = xs_ref[...].reshape(2 * tb, obs_dim).astype(jnp.bfloat16)

    # --- shared obs encoder: one MXU pass over 2*TB rows --------------------
    h = jnp.dot(x, we1_ref[...], preferred_element_type=jnp.float32) + be1_ref[...]
    h = jnp.maximum(h, 0.0).astype(jnp.bfloat16)
    e = jnp.dot(h, we2_ref[...], preferred_element_type=jnp.float32) + be2_ref[...]
    e1 = e[:tb]                              # obs_encoded       (TB, Hp) f32
    e2 = e[tb:]                              # next_obs_encoded  (TB, Hp) f32

    # Store next_enc immediately: 128-aligned slice store, ends e2's f32 live
    # range before the inverse/forward matmuls.
    out_ref[:, ap + hp:] = e2.astype(out_ref.dtype)

    e1b = e1.astype(jnp.bfloat16)
    e2b = e2.astype(jnp.bfloat16)
    act = act_ref[...].astype(jnp.bfloat16)

    # --- inverse model: pred_action = Lin(ReLU(e1 @ Wi1[:H] + e2 @ Wi1[H:])) -
    h_inv = (jnp.dot(e1b, wia_ref[...], preferred_element_type=jnp.float32)
             + jnp.dot(e2b, wib_ref[...], preferred_element_type=jnp.float32)
             + bi1_ref[...])
    h_inv = jnp.maximum(h_inv, 0.0).astype(jnp.bfloat16)
    pred_action = (jnp.dot(h_inv, wi2_ref[...], preferred_element_type=jnp.float32)
                   + bi2_ref[...])
    out_ref[:, :ap] = pred_action.astype(out_ref.dtype)

    # --- forward model: pred_next = Lin(ReLU(e1 @ Wf1[:H] + act @ Wf1[H:])) --
    h_fwd = (jnp.dot(e1b, wfa_ref[...], preferred_element_type=jnp.float32)
             + jnp.dot(act, wfb_ref[...], preferred_element_type=jnp.float32)
             + bf1_ref[...])
    h_fwd = jnp.maximum(h_fwd, 0.0).astype(jnp.bfloat16)
    pred_next = (jnp.dot(h_fwd, wf2_ref[...], preferred_element_type=jnp.float32)
                 + bf2_ref[...])
    out_ref[:, ap:ap + hp] = pred_next.astype(out_ref.dtype)


# --------------------------------------------------------------------------- #
# Parameter preparation (split + lane-pad + bf16 cast, done once)
# --------------------------------------------------------------------------- #
def prepare_icm_params(params):
    """Split the concat-consuming first layers, lane-pad to multiples of 128,
    and cast weights to bf16 (biases stay f32). Zero padding is exact."""
    H = params["we2"].shape[1]
    A = params["wi2"].shape[1]
    Hp = _round_up(H, LANE)
    Ap = _round_up(A, LANE)
    bf16, f32 = jnp.bfloat16, jnp.float32

    wi1, wf1 = params["wi1"], params["wf1"]

    weights = (
        _pad_axis(params["we1"], 1, Hp).astype(bf16),                       # we1 (obs, Hp)
        _pad_axis(_pad_axis(params["we2"], 0, Hp), 1, Hp).astype(bf16),     # we2 (Hp, Hp)
        _pad_axis(_pad_axis(wi1[:H], 0, Hp), 1, Hp).astype(bf16),           # wia (Hp, Hp)
        _pad_axis(_pad_axis(wi1[H:], 0, Hp), 1, Hp).astype(bf16),           # wib (Hp, Hp)
        _pad_axis(_pad_axis(params["wi2"], 0, Hp), 1, Ap).astype(bf16),     # wi2 (Hp, Ap)
        _pad_axis(_pad_axis(wf1[:H], 0, Hp), 1, Hp).astype(bf16),           # wfa (Hp, Hp)
        _pad_axis(wf1[H:], 1, Hp).astype(bf16),                             # wfb (A, Hp)
        _pad_axis(_pad_axis(params["wf2"], 0, Hp), 1, Hp).astype(bf16),     # wf2 (Hp, Hp)
    )
    biases = (
        _pad_axis(params["be1"], 1, Hp).astype(f32),
        _pad_axis(params["be2"], 1, Hp).astype(f32),
        _pad_axis(params["bi1"], 1, Hp).astype(f32),
        _pad_axis(params["bi2"], 1, Ap).astype(f32),
        _pad_axis(params["bf1"], 1, Hp).astype(f32),
        _pad_axis(params["bf2"], 1, Hp).astype(f32),
    )
    return dict(H=H, A=A, Hp=Hp, Ap=Ap, weights=weights, biases=biases)


# --------------------------------------------------------------------------- #
# Tiling heuristics
# --------------------------------------------------------------------------- #
def _vmem_capacity_bytes():
    try:
        return int(pltpu.get_tpu_info().vmem_capacity_bytes)
    except Exception:
        return 64 << 20  # conservative (v7x per-core)


def _choose_batch_tile(batch, vmem_bytes):
    """Batch tile: multiple of 16; cap 1024 on 128-MiB-VMEM chips (v5e/v6e),
    512 on 64-MiB chips (v7x); guarantee >= 2 grid steps (v7x megacore)."""
    cap = 1024 if vmem_bytes >= (96 << 20) else 512
    tb = min(cap, max(16, _round_up(batch, 16)))
    if batch > 16 and _round_up(batch, tb) // tb < 2:
        tb = max(16, _round_up((batch + 1) // 2, 16))
    return tb


# --------------------------------------------------------------------------- #
# Host wrapper
# --------------------------------------------------------------------------- #
def icm_forward(obs, next_obs, action, prepared, *, tb=None):
    B, obs_dim = obs.shape
    A, H = prepared["A"], prepared["H"]
    Ap, Hp = prepared["Ap"], prepared["Hp"]
    weights, biases = prepared["weights"], prepared["biases"]

    vmem_bytes = _vmem_capacity_bytes()
    if tb is None:
        tb = _choose_batch_tile(B, vmem_bytes)
    Bp = _round_up(B, tb)

    # Pre-stack (obs ; next_obs) so the kernel's sublane concat becomes a free
    # view reshape and one DMA stream. Inputs stay f32 (bf16 cast happens
    # in-kernel on the VPU). Padded batch rows are garbage and sliced off.
    xs = jnp.stack([obs, next_obs], axis=0).astype(jnp.float32)
    action = action.astype(jnp.float32)
    if Bp != B:
        xs = jnp.pad(xs, ((0, 0), (0, Bp - B), (0, 0)))
        action = jnp.pad(action, ((0, Bp - B), (0, 0)))

    out_dim = Ap + 2 * Hp

    def build(single_buffer):
        xs_spec = pl.BlockSpec((2, tb, obs_dim), lambda i: (0, i, 0))
        act_spec = pl.BlockSpec((tb, action.shape[1]), lambda i: (i, 0))

        def resident(arr):
            # Constant block index -> fetched once, stays VMEM-resident.
            if single_buffer:
                return pl.BlockSpec(arr.shape, lambda i: (0, 0),
                                    pipeline_mode=pl.Buffered(1))
            return pl.BlockSpec(arr.shape, lambda i: (0, 0))

        in_specs = ([xs_spec, act_spec]
                    + [resident(w) for w in weights]
                    + [resident(b) for b in biases])
        out_spec = pl.BlockSpec((tb, out_dim), lambda i: (i, 0))

        ck = dict(dimension_semantics=("parallel",))
        if vmem_bytes >= (96 << 20):
            # v5e/v6e: raise the 16/32 MiB scoped default, keep headroom.
            ck["vmem_limit_bytes"] = 64 << 20

        return pl.pallas_call(
            icm_kernel,
            out_shape=jax.ShapeDtypeStruct((Bp, out_dim), jnp.bfloat16),
            grid=(Bp // tb,),
            in_specs=in_specs,
            out_specs=out_spec,
            compiler_params=pltpu.CompilerParams(**ck),
        )

    args = (xs, action, *weights, *biases)
    try:
        out = build(single_buffer=True)(*args)
    except Exception:
        # Fallback if pipeline_mode=pl.Buffered(1) is rejected by this build.
        out = build(single_buffer=False)(*args)

    out = out[:B].astype(jnp.float32)
    pred_action = out[:, :A]
    pred_next = out[:, Ap:Ap + H]
    next_enc = out[:, Ap + Hp:Ap + Hp + H]
    return pred_action, pred_next, next_enc


# --------------------------------------------------------------------------- #
# Params + pure-JAX reference (PyTorch semantics, full f32)
# --------------------------------------------------------------------------- #
def init_params(key, obs_dim, act_dim, hidden):
    """PyTorch-Linear-style init (uniform +-1/sqrt(fan_in)).
    Weights stored (in_features, out_features); biases stored (1, out)."""
    def linear(k, fan_in, fan_out):
        kw, kb = jax.random.split(k)
        bound = 1.0 / (fan_in ** 0.5)
        w = jax.random.uniform(kw, (fan_in, fan_out), jnp.float32, -bound, bound)
        b = jax.random.uniform(kb, (1, fan_out), jnp.float32, -bound, bound)
        return w, b

    keys = jax.random.split(key, 6)
    we1, be1 = linear(keys[0], obs_dim, hidden)            # obs_encoder L1
    we2, be2 = linear(keys[1], hidden, hidden)             # obs_encoder L2
    wi1, bi1 = linear(keys[2], 2 * hidden, hidden)         # inverse_model L1
    wi2, bi2 = linear(keys[3], hidden, act_dim)            # inverse_model L2
    wf1, bf1 = linear(keys[4], hidden + act_dim, hidden)   # forward_model L1
    wf2, bf2 = linear(keys[5], hidden, hidden)             # forward_model L2
    return dict(we1=we1, be1=be1, we2=we2, be2=be2,
                wi1=wi1, bi1=bi1, wi2=wi2, bi2=bi2,
                wf1=wf1, bf1=bf1, wf2=wf2, bf2=bf2)


def icm_reference(obs, next_obs, action, p):
    def enc(x):
        h = jnp.maximum(x @ p["we1"] + p["be1"], 0.0)
        return h @ p["we2"] + p["be2"]
    e1 = enc(obs)
    e2 = enc(next_obs)
    h_inv = jnp.maximum(jnp.concatenate([e1, e2], -1) @ p["wi1"] + p["bi1"], 0.0)
    pred_action = h_inv @ p["wi2"] + p["bi2"]
    h_fwd = jnp.maximum(jnp.concatenate([e1, action], -1) @ p["wf1"] + p["bf1"], 0.0)
    pred_next = h_fwd @ p["wf2"] + p["bf2"]
    return pred_action, pred_next, e2


if __name__ == "__main__":
    B, OBS_DIM, ACT_DIM, HIDDEN = 64, 16, 8, 32

    key = jax.random.PRNGKey(0)
    k_obs, k_nobs, k_act, k_param = jax.random.split(key, 4)
    obs = jax.random.normal(k_obs, (B, OBS_DIM), jnp.float32)
    next_obs = jax.random.normal(k_nobs, (B, OBS_DIM), jnp.float32)
    action = jax.random.normal(k_act, (B, ACT_DIM), jnp.float32)
    params = init_params(k_param, OBS_DIM, ACT_DIM, HIDDEN)
    prepared = prepare_icm_params(params)

    pred_action, pred_next, next_enc = icm_forward(obs, next_obs, action, prepared)
    jax.block_until_ready((pred_action, pred_next, next_enc))

    # Correctness vs. pure-JAX f32 reference. Kernel matmuls run bf16-in /
    # f32-accumulate and the output slab is stored in bf16, so tolerance is
    # loose (expected rel. error ~1e-2 at these magnitudes).
    ra, rn, re = icm_reference(obs, next_obs, action, params)
    assert jnp.allclose(pred_action, ra, atol=5e-2, rtol=5e-2), \
        float(jnp.max(jnp.abs(pred_action - ra)))
    assert jnp.allclose(pred_next, rn, atol=5e-2, rtol=5e-2), \
        float(jnp.max(jnp.abs(pred_next - rn)))
    assert jnp.allclose(next_enc, re, atol=5e-2, rtol=5e-2), \
        float(jnp.max(jnp.abs(next_enc - re)))

    print("KERNEL_OK")
</pallas_src>

<mosaic_0001>
module attributes {stable_mosaic.version = 11 : i64} {
  func.func @icm_kernel(%arg0: i32, %arg1: memref<2x32x16xf32, #tpu.memory_space<vmem>>, %arg2: memref<32x8xf32, #tpu.memory_space<vmem>>, %arg3: memref<16x128xbf16, #tpu.memory_space<vmem>>, %arg4: memref<128x128xbf16, #tpu.memory_space<vmem>>, %arg5: memref<128x128xbf16, #tpu.memory_space<vmem>>, %arg6: memref<128x128xbf16, #tpu.memory_space<vmem>>, %arg7: memref<128x128xbf16, #tpu.memory_space<vmem>>, %arg8: memref<128x128xbf16, #tpu.memory_space<vmem>>, %arg9: memref<8x128xbf16, #tpu.memory_space<vmem>>, %arg10: memref<128x128xbf16, #tpu.memory_space<vmem>>, %arg11: memref<1x128xf32, #tpu.memory_space<vmem>>, %arg12: memref<1x128xf32, #tpu.memory_space<vmem>>, %arg13: memref<1x128xf32, #tpu.memory_space<vmem>>, %arg14: memref<1x128xf32, #tpu.memory_space<vmem>>, %arg15: memref<1x128xf32, #tpu.memory_space<vmem>>, %arg16: memref<1x128xf32, #tpu.memory_space<vmem>>, %arg17: memref<32x384xbf16, #tpu.memory_space<vmem>>) attributes {dimension_semantics = [#tpu.dimension_semantics<parallel>], iteration_bounds = array<i64: 2>, scalar_prefetch = 0 : i64, scratch_operands = 0 : i64, tpu.core_type = #tpu.core_type<tc>, window_params = [{transform_indices = @transform_0, window_bounds = array<i64: 2, 32, 16>}, {transform_indices = @transform_1, window_bounds = array<i64: 32, 8>}, {pipeline_mode = #tpu.pipeline_mode<synchronous>, transform_indices = @transform_2, window_bounds = array<i64: 16, 128>}, {pipeline_mode = #tpu.pipeline_mode<synchronous>, transform_indices = @transform_3, window_bounds = array<i64: 128, 128>}, {pipeline_mode = #tpu.pipeline_mode<synchronous>, transform_indices = @transform_4, window_bounds = array<i64: 128, 128>}, {pipeline_mode = #tpu.pipeline_mode<synchronous>, transform_indices = @transform_5, window_bounds = array<i64: 128, 128>}, {pipeline_mode = #tpu.pipeline_mode<synchronous>, transform_indices = @transform_6, window_bounds = array<i64: 128, 128>}, {pipeline_mode = #tpu.pipeline_mode<synchronous>, transform_indices = @transform_7, window_bounds = array<i64: 128, 128>}, {pipeline_mode = #tpu.pipeline_mode<synchronous>, transform_indices = @transform_8, window_bounds = array<i64: 8, 128>}, {pipeline_mode = #tpu.pipeline_mode<synchronous>, transform_indices = @transform_9, window_bounds = array<i64: 128, 128>}, {pipeline_mode = #tpu.pipeline_mode<synchronous>, transform_indices = @transform_10, window_bounds = array<i64: 1, 128>}, {pipeline_mode = #tpu.pipeline_mode<synchronous>, transform_indices = @transform_11, window_bounds = array<i64: 1, 128>}, {pipeline_mode = #tpu.pipeline_mode<synchronous>, transform_indices = @transform_12, window_bounds = array<i64: 1, 128>}, {pipeline_mode = #tpu.pipeline_mode<synchronous>, transform_indices = @transform_13, window_bounds = array<i64: 1, 128>}, {pipeline_mode = #tpu.pipeline_mode<synchronous>, transform_indices = @transform_14, window_bounds = array<i64: 1, 128>}, {pipeline_mode = #tpu.pipeline_mode<synchronous>, transform_indices = @transform_15, window_bounds = array<i64: 1, 128>}, {transform_indices = @transform_16, window_bounds = array<i64: 32, 384>}]} {
    %c0 = arith.constant 0 : index
    %c0_0 = arith.constant 0 : index
    %c0_1 = arith.constant 0 : index
    %0 = vector.load %arg1[%c0, %c0_0, %c0_1] : memref<2x32x16xf32, #tpu.memory_space<vmem>>, vector<2x32x16xf32>
    %1 = vector.shape_cast %0 : vector<2x32x16xf32> to vector<64x16xf32>
    %2 = arith.truncf %1 : vector<64x16xf32> to vector<64x16xbf16>
    %c0_2 = arith.constant 0 : index
    %c0_3 = arith.constant 0 : index
    %3 = vector.load %arg3[%c0_2, %c0_3] : memref<16x128xbf16, #tpu.memory_space<vmem>>, vector<16x128xbf16>
    %cst = arith.constant dense<0.000000e+00> : vector<64x128xf32>
    %4 = tpu.matmul %2, %3, %cst {dimension_numbers = #tpu.dot_dimension_numbers<[1], [0], [0], [1], [0, 0, 1, 1], [], []>} : vector<64x16xbf16>, vector<16x128xbf16>, vector<64x128xf32> -> vector<64x128xf32>
    %c0_4 = arith.constant 0 : index
    %c0_5 = arith.constant 0 : index
    %5 = vector.load %arg11[%c0_4, %c0_5] : memref<1x128xf32, #tpu.memory_space<vmem>>, vector<1x128xf32>
    %6 = vector.broadcast %5 : vector<1x128xf32> to vector<64x128xf32>
    %7 = arith.addf %4, %6 : vector<64x128xf32>
    %cst_6 = arith.constant 0.000000e+00 : f32
    %8 = vector.broadcast %cst_6 : f32 to vector<64x128xf32>
    %9 = arith.maximumf %7, %8 : vector<64x128xf32>
    %10 = arith.truncf %9 : vector<64x128xf32> to vector<64x128xbf16>
    %c0_7 = arith.constant 0 : index
    %c0_8 = arith.constant 0 : index
    %11 = vector.load %arg4[%c0_7, %c0_8] : memref<128x128xbf16, #tpu.memory_space<vmem>>, vector<128x128xbf16>
    %cst_9 = arith.constant dense<0.000000e+00> : vector<64x128xf32>
    %12 = tpu.matmul %10, %11, %cst_9 {dimension_numbers = #tpu.dot_dimension_numbers<[1], [0], [0], [1], [0, 0, 1, 1], [], []>} : vector<64x128xbf16>, vector<128x128xbf16>, vector<64x128xf32> -> vector<64x128xf32>
    %c0_10 = arith.constant 0 : index
    %c0_11 = arith.constant 0 : index
    %13 = vector.load %arg12[%c0_10, %c0_11] : memref<1x128xf32, #tpu.memory_space<vmem>>, vector<1x128xf32>
    %14 = vector.broadcast %13 : vector<1x128xf32> to vector<64x128xf32>
    %15 = arith.addf %12, %14 : vector<64x128xf32>
    %16 = vector.extract_strided_slice %15 {offsets = [0, 0], sizes = [32, 128], strides = [1, 1]} : vector<64x128xf32> to vector<32x128xf32>
    %17 = vector.extract_strided_slice %15 {offsets = [32, 0], sizes = [32, 128], strides = [1, 1]} : vector<64x128xf32> to vector<32x128xf32>
    %18 = arith.truncf %17 : vector<32x128xf32> to vector<32x128xbf16>
    %c0_12 = arith.constant 0 : index
    %c256 = arith.constant 256 : index
    %19 = vector.load %arg17[%c0_12, %c256] : memref<32x384xbf16, #tpu.memory_space<vmem>>, vector<32x128xbf16>
    tpu.vector_store %arg17[%c0_12, %c256], %18 {strides = array<i32>} : memref<32x384xbf16, #tpu.memory_space<vmem>>, vector<32x128xbf16>,
    %20 = arith.truncf %16 : vector<32x128xf32> to vector<32x128xbf16>
    %21 = arith.truncf %17 : vector<32x128xf32> to vector<32x128xbf16>
    %c0_13 = arith.constant 0 : index
    %c0_14 = arith.constant 0 : index
    %22 = vector.load %arg2[%c0_13, %c0_14] : memref<32x8xf32, #tpu.memory_space<vmem>>, vector<32x8xf32>
    %23 = arith.truncf %22 : vector<32x8xf32> to vector<32x8xbf16>
    %c0_15 = arith.constant 0 : index
    %c0_16 = arith.constant 0 : index
    %24 = vector.load %arg5[%c0_15, %c0_16] : memref<128x128xbf16, #tpu.memory_space<vmem>>, vector<128x128xbf16>
    %cst_17 = arith.constant dense<0.000000e+00> : vector<32x128xf32>
    %25 = tpu.matmul %20, %24, %cst_17 {dimension_numbers = #tpu.dot_dimension_numbers<[1], [0], [0], [1], [0, 0, 1, 1], [], []>} : vector<32x128xbf16>, vector<128x128xbf16>, vector<32x128xf32> -> vector<32x128xf32>
    %c0_18 = arith.constant 0 : index
    %c0_19 = arith.constant 0 : index
    %26 = vector.load %arg6[%c0_18, %c0_19] : memref<128x128xbf16, #tpu.memory_space<vmem>>, vector<128x128xbf16>
    %cst_20 = arith.constant dense<0.000000e+00> : vector<32x128xf32>
    %27 = tpu.matmul %21, %26, %cst_20 {dimension_numbers = #tpu.dot_dimension_numbers<[1], [0], [0], [1], [0, 0, 1, 1], [], []>} : vector<32x128xbf16>, vector<128x128xbf16>, vector<32x128xf32> -> vector<32x128xf32>
    %28 = arith.addf %25, %27 : vector<32x128xf32>
    %c0_21 = arith.constant 0 : index
    %c0_22 = arith.constant 0 : index
    %29 = vector.load %arg13[%c0_21, %c0_22] : memref<1x128xf32, #tpu.memory_space<vmem>>, vector<1x128xf32>
    %30 = vector.broadcast %29 : vector<1x128xf32> to vector<32x128xf32>
    %31 = arith.addf %28, %30 : vector<32x128xf32>
    %cst_23 = arith.constant 0.000000e+00 : f32
    %32 = vector.broadcast %cst_23 : f32 to vector<32x128xf32>
    %33 = arith.maximumf %31, %32 : vector<32x128xf32>
    %34 = arith.truncf %33 : vector<32x128xf32> to vector<32x128xbf16>
    %c0_24 = arith.constant 0 : index
    %c0_25 = arith.constant 0 : index
    %35 = vector.load %arg7[%c0_24, %c0_25] : memref<128x128xbf16, #tpu.memory_space<vmem>>, vector<128x128xbf16>
    %cst_26 = arith.constant dense<0.000000e+00> : vector<32x128xf32>
    %36 = tpu.matmul %34, %35, %cst_26 {dimension_numbers = #tpu.dot_dimension_numbers<[1], [0], [0], [1], [0, 0, 1, 1], [], []>} : vector<32x128xbf16>, vector<128x128xbf16>, vector<32x128xf32> -> vector<32x128xf32>
    %c0_27 = arith.constant 0 : index
    %c0_28 = arith.constant 0 : index
    %37 = vector.load %arg14[%c0_27, %c0_28] : memref<1x128xf32, #tpu.memory_space<vmem>>, vector<1x128xf32>
    %38 = vector.broadcast %37 : vector<1x128xf32> to vector<32x128xf32>
    %39 = arith.addf %36, %38 : vector<32x128xf32>
    %40 = arith.truncf %39 : vector<32x128xf32> to vector<32x128xbf16>
    %c0_29 = arith.constant 0 : index
    %c0_30 = arith.constant 0 : index
    %41 = vector.load %arg17[%c0_29, %c0_30] : memref<32x384xbf16, #tpu.memory_space<vmem>>, vector<32x128xbf16>
    tpu.vector_store %arg17[%c0_29, %c0_30], %40 {strides = array<i32>} : memref<32x384xbf16, #tpu.memory_space<vmem>>, vector<32x128xbf16>,
    %c0_31 = arith.constant 0 : index
    %c0_32 = arith.constant 0 : index
    %42 = vector.load %arg8[%c0_31, %c0_32] : memref<128x128xbf16, #tpu.memory_space<vmem>>, vector<128x128xbf16>
    %cst_33 = arith.constant dense<0.000000e+00> : vector<32x128xf32>
    %43 = tpu.matmul %20, %42, %cst_33 {dimension_numbers = #tpu.dot_dimension_numbers<[1], [0], [0], [1], [0, 0, 1, 1], [], []>} : vector<32x128xbf16>, vector<128x128xbf16>, vector<32x128xf32> -> vector<32x128xf32>
    %c0_34 = arith.constant 0 : index
    %c0_35 = arith.constant 0 : index
    %44 = vector.load %arg9[%c0_34, %c0_35] : memref<8x128xbf16, #tpu.memory_space<vmem>>, vector<8x128xbf16>
    %cst_36 = arith.constant dense<0.000000e+00> : vector<32x128xf32>
    %45 = tpu.matmul %23, %44, %cst_36 {dimension_numbers = #tpu.dot_dimension_numbers<[1], [0], [0], [1], [0, 0, 1, 1], [], []>} : vector<32x8xbf16>, vector<8x128xbf16>, vector<32x128xf32> -> vector<32x128xf32>
    %46 = arith.addf %43, %45 : vector<32x128xf32>
    %c0_37 = arith.constant 0 : index
    %c0_38 = arith.constant 0 : index
    %47 = vector.load %arg15[%c0_37, %c0_38] : memref<1x128xf32, #tpu.memory_space<vmem>>, vector<1x128xf32>
    %48 = vector.broadcast %47 : vector<1x128xf32> to vector<32x128xf32>
    %49 = arith.addf %46, %48 : vector<32x128xf32>
    %cst_39 = arith.constant 0.000000e+00 : f32
    %50 = vector.broadcast %cst_39 : f32 to vector<32x128xf32>
    %51 = arith.maximumf %49, %50 : vector<32x128xf32>
    %52 = arith.truncf %51 : vector<32x128xf32> to vector<32x128xbf16>
    %c0_40 = arith.constant 0 : index
    %c0_41 = arith.constant 0 : index
    %53 = vector.load %arg10[%c0_40, %c0_41] : memref<128x128xbf16, #tpu.memory_space<vmem>>, vector<128x128xbf16>
    %cst_42 = arith.constant dense<0.000000e+00> : vector<32x128xf32>
    %54 = tpu.matmul %52, %53, %cst_42 {dimension_numbers = #tpu.dot_dimension_numbers<[1], [0], [0], [1], [0, 0, 1, 1], [], []>} : vector<32x128xbf16>, vector<128x128xbf16>, vector<32x128xf32> -> vector<32x128xf32>
    %c0_43 = arith.constant 0 : index
    %c0_44 = arith.constant 0 : index
    %55 = vector.load %arg16[%c0_43, %c0_44] : memref<1x128xf32, #tpu.memory_space<vmem>>, vector<1x128xf32>
    %56 = vector.broadcast %55 : vector<1x128xf32> to vector<32x128xf32>
    %57 = arith.addf %54, %56 : vector<32x128xf32>
    %58 = arith.truncf %57 : vector<32x128xf32> to vector<32x128xbf16>
    %c0_45 = arith.constant 0 : index
    %c128 = arith.constant 128 : index
    %59 = vector.load %arg17[%c0_45, %c128] : memref<32x384xbf16, #tpu.memory_space<vmem>>, vector<32x128xbf16>
    tpu.vector_store %arg17[%c0_45, %c128], %58 {strides = array<i32>} : memref<32x384xbf16, #tpu.memory_space<vmem>>, vector<32x128xbf16>,
    return
  }
  func.func @transform_0(%arg0: i32) -> (i32, i32, i32) {
    %c0_i32 = arith.constant 0 : i32
    %c0_i32_0 = arith.constant 0 : i32
    %c0_i32_1 = arith.constant 0 : i32
    return %c0_i32, %arg0, %c0_i32_0 : i32, i32, i32
  }
  func.func @transform_1(%arg0: i32) -> (i32, i32) {
    %c0_i32 = arith.constant 0 : i32
    %c0_i32_0 = arith.constant 0 : i32
    return %arg0, %c0_i32 : i32, i32
  }
  func.func @transform_2(%arg0: i32) -> (i32, i32) {
    %c0_i32 = arith.constant 0 : i32
    %c0_i32_0 = arith.constant 0 : i32
    %c0_i32_1 = arith.constant 0 : i32
    return %c0_i32, %c0_i32_0 : i32, i32
  }
  func.func @transform_3(%arg0: i32) -> (i32, i32) {
    %c0_i32 = arith.constant 0 : i32
    %c0_i32_0 = arith.constant 0 : i32
    %c0_i32_1 = arith.constant 0 : i32
    return %c0_i32, %c0_i32_0 : i32, i32
  }
  func.func @transform_4(%arg0: i32) -> (i32, i32) {
    %c0_i32 = arith.constant 0 : i32
    %c0_i32_0 = arith.constant 0 : i32
    %c0_i32_1 = arith.constant 0 : i32
    return %c0_i32, %c0_i32_0 : i32, i32
  }
  func.func @transform_5(%arg0: i32) -> (i32, i32) {
    %c0_i32 = arith.constant 0 : i32
    %c0_i32_0 = arith.constant 0 : i32
    %c0_i32_1 = arith.constant 0 : i32
    return %c0_i32, %c0_i32_0 : i32, i32
  }
  func.func @transform_6(%arg0: i32) -> (i32, i32) {
    %c0_i32 = arith.constant 0 : i32
    %c0_i32_0 = arith.constant 0 : i32
    %c0_i32_1 = arith.constant 0 : i32
    return %c0_i32, %c0_i32_0 : i32, i32
  }
  func.func @transform_7(%arg0: i32) -> (i32, i32) {
    %c0_i32 = arith.constant 0 : i32
    %c0_i32_0 = arith.constant 0 : i32
    %c0_i32_1 = arith.constant 0 : i32
    return %c0_i32, %c0_i32_0 : i32, i32
  }
  func.func @transform_8(%arg0: i32) -> (i32, i32) {
    %c0_i32 = arith.constant 0 : i32
    %c0_i32_0 = arith.constant 0 : i32
    %c0_i32_1 = arith.constant 0 : i32
    return %c0_i32, %c0_i32_0 : i32, i32
  }
  func.func @transform_9(%arg0: i32) -> (i32, i32) {
    %c0_i32 = arith.constant 0 : i32
    %c0_i32_0 = arith.constant 0 : i32
    %c0_i32_1 = arith.constant 0 : i32
    return %c0_i32, %c0_i32_0 : i32, i32
  }
  func.func @transform_10(%arg0: i32) -> (i32, i32) {
    %c0_i32 = arith.constant 0 : i32
    %c0_i32_0 = arith.constant 0 : i32
    %c0_i32_1 = arith.constant 0 : i32
    return %c0_i32, %c0_i32_0 : i32, i32
  }
  func.func @transform_11(%arg0: i32) -> (i32, i32) {
    %c0_i32 = arith.constant 0 : i32
    %c0_i32_0 = arith.constant 0 : i32
    %c0_i32_1 = arith.constant 0 : i32
    return %c0_i32, %c0_i32_0 : i32, i32
  }
  func.func @transform_12(%arg0: i32) -> (i32, i32) {
    %c0_i32 = arith.constant 0 : i32
    %c0_i32_0 = arith.constant 0 : i32
    %c0_i32_1 = arith.constant 0 : i32
    return %c0_i32, %c0_i32_0 : i32, i32
  }
  func.func @transform_13(%arg0: i32) -> (i32, i32) {
    %c0_i32 = arith.constant 0 : i32
    %c0_i32_0 = arith.constant 0 : i32
    %c0_i32_1 = arith.constant 0 : i32
    return %c0_i32, %c0_i32_0 : i32, i32
  }
  func.func @transform_14(%arg0: i32) -> (i32, i32) {
    %c0_i32 = arith.constant 0 : i32
    %c0_i32_0 = arith.constant 0 : i32
    %c0_i32_1 = arith.constant 0 : i32
    return %c0_i32, %c0_i32_0 : i32, i32
  }
  func.func @transform_15(%arg0: i32) -> (i32, i32) {
    %c0_i32 = arith.constant 0 : i32
    %c0_i32_0 = arith.constant 0 : i32
    %c0_i32_1 = arith.constant 0 : i32
    return %c0_i32, %c0_i32_0 : i32, i32
  }
  func.func @transform_16(%arg0: i32) -> (i32, i32) {
    %c0_i32 = arith.constant 0 : i32
    %c0_i32_0 = arith.constant 0 : i32
    return %arg0, %c0_i32 : i32, i32
  }
}

module attributes {stable_mosaic.version = 11 : i64} {
  func.func @icm_kernel(%arg0: i32, %arg1: memref<2x32x16xf32, #tpu.memory_space<vmem>>, %arg2: memref<32x8xf32, #tpu.memory_space<vmem>>, %arg3: memref<16x128xbf16, #tpu.memory_space<vmem>>, %arg4: memref<128x128xbf16, #tpu.memory_space<vmem>>, %arg5: memref<128x128xbf16, #tpu.memory_space<vmem>>, %arg6: memref<128x128xbf16, #tpu.memory_space<vmem>>, %arg7: memref<128x128xbf16, #tpu.memory_space<vmem>>, %arg8: memref<128x128xbf16, #tpu.memory_space<vmem>>, %arg9: memref<8x128xbf16, #tpu.memory_space<vmem>>, %arg10: memref<128x128xbf16, #tpu.memory_space<vmem>>, %arg11: memref<1x128xf32, #tpu.memory_space<vmem>>, %arg12: memref<1x128xf32, #tpu.memory_space<vmem>>, %arg13: memref<1x128xf32, #tpu.memory_space<vmem>>, %arg14: memref<1x128xf32, #tpu.memory_space<vmem>>, %arg15: memref<1x128xf32, #tpu.memory_space<vmem>>, %arg16: memref<1x128xf32, #tpu.memory_space<vmem>>, %arg17: memref<32x384xbf16, #tpu.memory_space<vmem>>) attributes {dimension_semantics = [#tpu.dimension_semantics<parallel>], iteration_bounds = array<i64: 2>, scalar_prefetch = 0 : i64, scratch_operands = 0 : i64, tpu.core_type = #tpu.core_type<tc>, window_params = [{transform_indices = @transform_0, window_bounds = array<i64: 2, 32, 16>}, {transform_indices = @transform_1, window_bounds = array<i64: 32, 8>}, {pipeline_mode = #tpu.pipeline_mode<synchronous>, transform_indices = @transform_2, window_bounds = array<i64: 16, 128>}, {pipeline_mode = #tpu.pipeline_mode<synchronous>, transform_indices = @transform_3, window_bounds = array<i64: 128, 128>}, {pipeline_mode = #tpu.pipeline_mode<synchronous>, transform_indices = @transform_4, window_bounds = array<i64: 128, 128>}, {pipeline_mode = #tpu.pipeline_mode<synchronous>, transform_indices = @transform_5, window_bounds = array<i64: 128, 128>}, {pipeline_mode = #tpu.pipeline_mode<synchronous>, transform_indices = @transform_6, window_bounds = array<i64: 128, 128>}, {pipeline_mode = #tpu.pipeline_mode<synchronous>, transform_indices = @transform_7, window_bounds = array<i64: 128, 128>}, {pipeline_mode = #tpu.pipeline_mode<synchronous>, transform_indices = @transform_8, window_bounds = array<i64: 8, 128>}, {pipeline_mode = #tpu.pipeline_mode<synchronous>, transform_indices = @transform_9, window_bounds = array<i64: 128, 128>}, {pipeline_mode = #tpu.pipeline_mode<synchronous>, transform_indices = @transform_10, window_bounds = array<i64: 1, 128>}, {pipeline_mode = #tpu.pipeline_mode<synchronous>, transform_indices = @transform_11, window_bounds = array<i64: 1, 128>}, {pipeline_mode = #tpu.pipeline_mode<synchronous>, transform_indices = @transform_12, window_bounds = array<i64: 1, 128>}, {pipeline_mode = #tpu.pipeline_mode<synchronous>, transform_indices = @transform_13, window_bounds = array<i64: 1, 128>}, {pipeline_mode = #tpu.pipeline_mode<synchronous>, transform_indices = @transform_14, window_bounds = array<i64: 1, 128>}, {pipeline_mode = #tpu.pipeline_mode<synchronous>, transform_indices = @transform_15, window_bounds = array<i64: 1, 128>}, {transform_indices = @transform_16, window_bounds = array<i64: 32, 384>}]} {
    %c0 = arith.constant 0 : index
    %c0_0 = arith.constant 0 : index
    %c0_1 = arith.constant 0 : index
    %0 = vector.load %arg1[%c0, %c0_0, %c0_1] : memref<2x32x16xf32, #tpu.memory_space<vmem>>, vector<2x32x16xf32>
    %1 = vector.shape_cast %0 : vector<2x32x16xf32> to vector<64x16xf32>
    %2 = arith.truncf %1 : vector<64x16xf32> to vector<64x16xbf16>
    %c0_2 = arith.constant 0 : index
    %c0_3 = arith.constant 0 : index
    %3 = vector.load %arg3[%c0_2, %c0_3] : memref<16x128xbf16, #tpu.memory_space<vmem>>, vector<16x128xbf16>
    %cst = arith.constant dense<0.000000e+00> : vector<64x128xf32>
    %4 = tpu.matmul %2, %3, %cst {dimension_numbers = #tpu.dot_dimension_numbers<[1], [0], [0], [1], [0, 0, 1, 1], [], []>} : vector<64x16xbf16>, vector<16x128xbf16>, vector<64x128xf32> -> vector<64x128xf32>
    %c0_4 = arith.constant 0 : index
    %c0_5 = arith.constant 0 : index
    %5 = vector.load %arg11[%c0_4, %c0_5] : memref<1x128xf32, #tpu.memory_space<vmem>>, vector<1x128xf32>
    %6 = vector.broadcast %5 : vector<1x128xf32> to vector<64x128xf32>
    %7 = arith.addf %4, %6 : vector<64x128xf32>
    %cst_6 = arith.constant 0.000000e+00 : f32
    %8 = vector.broadcast %cst_6 : f32 to vector<64x128xf32>
    %9 = arith.maximumf %7, %8 : vector<64x128xf32>
    %10 = arith.truncf %9 : vector<64x128xf32> to vector<64x128xbf16>
    %c0_7 = arith.constant 0 : index
    %c0_8 = arith.constant 0 : index
    %11 = vector.load %arg4[%c0_7, %c0_8] : memref<128x128xbf16, #tpu.memory_space<vmem>>, vector<128x128xbf16>
    %cst_9 = arith.constant dense<0.000000e+00> : vector<64x128xf32>
    %12 = tpu.matmul %10, %11, %cst_9 {dimension_numbers = #tpu.dot_dimension_numbers<[1], [0], [0], [1], [0, 0, 1, 1], [], []>} : vector<64x128xbf16>, vector<128x128xbf16>, vector<64x128xf32> -> vector<64x128xf32>
    %c0_10 = arith.constant 0 : index
    %c0_11 = arith.constant 0 : index
    %13 = vector.load %arg12[%c0_10, %c0_11] : memref<1x128xf32, #tpu.memory_space<vmem>>, vector<1x128xf32>
    %14 = vector.broadcast %13 : vector<1x128xf32> to vector<64x128xf32>
    %15 = arith.addf %12, %14 : vector<64x128xf32>
    %16 = vector.extract_strided_slice %15 {offsets = [0, 0], sizes = [32, 128], strides = [1, 1]} : vector<64x128xf32> to vector<32x128xf32>
    %17 = vector.extract_strided_slice %15 {offsets = [32, 0], sizes = [32, 128], strides = [1, 1]} : vector<64x128xf32> to vector<32x128xf32>
    %18 = arith.truncf %17 : vector<32x128xf32> to vector<32x128xbf16>
    %c0_12 = arith.constant 0 : index
    %c256 = arith.constant 256 : index
    %19 = vector.load %arg17[%c0_12, %c256] : memref<32x384xbf16, #tpu.memory_space<vmem>>, vector<32x128xbf16>
    tpu.vector_store %arg17[%c0_12, %c256], %18 {strides = array<i32>} : memref<32x384xbf16, #tpu.memory_space<vmem>>, vector<32x128xbf16>,
    %20 = arith.truncf %16 : vector<32x128xf32> to vector<32x128xbf16>
    %21 = arith.truncf %17 : vector<32x128xf32> to vector<32x128xbf16>
    %c0_13 = arith.constant 0 : index
    %c0_14 = arith.constant 0 : index
    %22 = vector.load %arg2[%c0_13, %c0_14] : memref<32x8xf32, #tpu.memory_space<vmem>>, vector<32x8xf32>
    %23 = arith.truncf %22 : vector<32x8xf32> to vector<32x8xbf16>
    %c0_15 = arith.constant 0 : index
    %c0_16 = arith.constant 0 : index
    %24 = vector.load %arg5[%c0_15, %c0_16] : memref<128x128xbf16, #tpu.memory_space<vmem>>, vector<128x128xbf16>
    %cst_17 = arith.constant dense<0.000000e+00> : vector<32x128xf32>
    %25 = tpu.matmul %20, %24, %cst_17 {dimension_numbers = #tpu.dot_dimension_numbers<[1], [0], [0], [1], [0, 0, 1, 1], [], []>} : vector<32x128xbf16>, vector<128x128xbf16>, vector<32x128xf32> -> vector<32x128xf32>
    %c0_18 = arith.constant 0 : index
    %c0_19 = arith.constant 0 : index
    %26 = vector.load %arg6[%c0_18, %c0_19] : memref<128x128xbf16, #tpu.memory_space<vmem>>, vector<128x128xbf16>
    %cst_20 = arith.constant dense<0.000000e+00> : vector<32x128xf32>
    %27 = tpu.matmul %21, %26, %cst_20 {dimension_numbers = #tpu.dot_dimension_numbers<[1], [0], [0], [1], [0, 0, 1, 1], [], []>} : vector<32x128xbf16>, vector<128x128xbf16>, vector<32x128xf32> -> vector<32x128xf32>
    %28 = arith.addf %25, %27 : vector<32x128xf32>
    %c0_21 = arith.constant 0 : index
    %c0_22 = arith.constant 0 : index
    %29 = vector.load %arg13[%c0_21, %c0_22] : memref<1x128xf32, #tpu.memory_space<vmem>>, vector<1x128xf32>
    %30 = vector.broadcast %29 : vector<1x128xf32> to vector<32x128xf32>
    %31 = arith.addf %28, %30 : vector<32x128xf32>
    %cst_23 = arith.constant 0.000000e+00 : f32
    %32 = vector.broadcast %cst_23 : f32 to vector<32x128xf32>
    %33 = arith.maximumf %31, %32 : vector<32x128xf32>
    %34 = arith.truncf %33 : vector<32x128xf32> to vector<32x128xbf16>
    %c0_24 = arith.constant 0 : index
    %c0_25 = arith.constant 0 : index
    %35 = vector.load %arg7[%c0_24, %c0_25] : memref<128x128xbf16, #tpu.memory_space<vmem>>, vector<128x128xbf16>
    %cst_26 = arith.constant dense<0.000000e+00> : vector<32x128xf32>
    %36 = tpu.matmul %34, %35, %cst_26 {dimension_numbers = #tpu.dot_dimension_numbers<[1], [0], [0], [1], [0, 0, 1, 1], [], []>} : vector<32x128xbf16>, vector<128x128xbf16>, vector<32x128xf32> -> vector<32x128xf32>
    %c0_27 = arith.constant 0 : index
    %c0_28 = arith.constant 0 : index
    %37 = vector.load %arg14[%c0_27, %c0_28] : memref<1x128xf32, #tpu.memory_space<vmem>>, vector<1x128xf32>
    %38 = vector.broadcast %37 : vector<1x128xf32> to vector<32x128xf32>
    %39 = arith.addf %36, %38 : vector<32x128xf32>
    %40 = arith.truncf %39 : vector<32x128xf32> to vector<32x128xbf16>
    %c0_29 = arith.constant 0 : index
    %c0_30 = arith.constant 0 : index
    %41 = vector.load %arg17[%c0_29, %c0_30] : memref<32x384xbf16, #tpu.memory_space<vmem>>, vector<32x128xbf16>
    tpu.vector_store %arg17[%c0_29, %c0_30], %40 {strides = array<i32>} : memref<32x384xbf16, #tpu.memory_space<vmem>>, vector<32x128xbf16>,
    %c0_31 = arith.constant 0 : index
    %c0_32 = arith.constant 0 : index
    %42 = vector.load %arg8[%c0_31, %c0_32] : memref<128x128xbf16, #tpu.memory_space<vmem>>, vector<128x128xbf16>
    %cst_33 = arith.constant dense<0.000000e+00> : vector<32x128xf32>
    %43 = tpu.matmul %20, %42, %cst_33 {dimension_numbers = #tpu.dot_dimension_numbers<[1], [0], [0], [1], [0, 0, 1, 1], [], []>} : vector<32x128xbf16>, vector<128x128xbf16>, vector<32x128xf32> -> vector<32x128xf32>
    %c0_34 = arith.constant 0 : index
    %c0_35 = arith.constant 0 : index
    %44 = vector.load %arg9[%c0_34, %c0_35] : memref<8x128xbf16, #tpu.memory_space<vmem>>, vector<8x128xbf16>
    %cst_36 = arith.constant dense<0.000000e+00> : vector<32x128xf32>
    %45 = tpu.matmul %23, %44, %cst_36 {dimension_numbers = #tpu.dot_dimension_numbers<[1], [0], [0], [1], [0, 0, 1, 1], [], []>} : vector<32x8xbf16>, vector<8x128xbf16>, vector<32x128xf32> -> vector<32x128xf32>
    %46 = arith.addf %43, %45 : vector<32x128xf32>
    %c0_37 = arith.constant 0 : index
    %c0_38 = arith.constant 0 : index
    %47 = vector.load %arg15[%c0_37, %c0_38] : memref<1x128xf32, #tpu.memory_space<vmem>>, vector<1x128xf32>
    %48 = vector.broadcast %47 : vector<1x128xf32> to vector<32x128xf32>
    %49 = arith.addf %46, %48 : vector<32x128xf32>
    %cst_39 = arith.constant 0.000000e+00 : f32
    %50 = vector.broadcast %cst_39 : f32 to vector<32x128xf32>
    %51 = arith.maximumf %49, %50 : vector<32x128xf32>
    %52 = arith.truncf %51 : vector<32x128xf32> to vector<32x128xbf16>
    %c0_40 = arith.constant 0 : index
    %c0_41 = arith.constant 0 : index
    %53 = vector.load %arg10[%c0_40, %c0_41] : memref<128x128xbf16, #tpu.memory_space<vmem>>, vector<128x128xbf16>
    %cst_42 = arith.constant dense<0.000000e+00> : vector<32x128xf32>
    %54 = tpu.matmul %52, %53, %cst_42 {dimension_numbers = #tpu.dot_dimension_numbers<[1], [0], [0], [1], [0, 0, 1, 1], [], []>} : vector<32x128xbf16>, vector<128x128xbf16>, vector<32x128xf32> -> vector<32x128xf32>
    %c0_43 = arith.constant 0 : index
    %c0_44 = arith.constant 0 : index
    %55 = vector.load %arg16[%c0_43, %c0_44] : memref<1x128xf32, #tpu.memory_space<vmem>>, vector<1x128xf32>
    %56 = vector.broadcast %55 : vector<1x128xf32> to vector<32x128xf32>
    %57 = arith.addf %54, %56 : vector<32x128xf32>
    %58 = arith.truncf %57 : vector<32x128xf32> to vector<32x128xbf16>
    %c0_45 = arith.constant 0 : index
    %c128 = arith.constant 128 : index
    %59 = vector.load %arg17[%c0_45, %c128] : memref<32x384xbf16, #tpu.memory_space<vmem>>, vector<32x128xbf16>
    tpu.vector_store %arg17[%c0_45, %c128], %58 {strides = array<i32>} : memref<32x384xbf16, #tpu.memory_space<vmem>>, vector<32x128xbf16>,
    return
  }
  func.func @transform_0(%arg0: i32) -> (i32, i32, i32) {
    %c0_i32 = arith.constant 0 : i32
    %c0_i32_0 = arith.constant 0 : i32
    %c0_i32_1 = arith.constant 0 : i32
    return %c0_i32, %arg0, %c0_i32_0 : i32, i32, i32
  }
  func.func @transform_1(%arg0: i32) -> (i32, i32) {
    %c0_i32 = arith.constant 0 : i32
    %c0_i32_0 = arith.constant 0 : i32
    return %arg0, %c0_i32 : i32, i32
  }
  func.func @transform_2(%arg0: i32) -> (i32, i32) {
    %c0_i32 = arith.constant 0 : i32
    %c0_i32_0 = arith.constant 0 : i32
    %c0_i32_1 = arith.constant 0 : i32
    return %c0_i32, %c0_i32_0 : i32, i32
  }
  func.func @transform_3(%arg0: i32) -> (i32, i32) {
    %c0_i32 = arith.constant 0 : i32
    %c0_i32_0 = arith.constant 0 : i32
    %c0_i32_1 = arith.constant 0 : i32
    return %c0_i32, %c0_i32_0 : i32, i32
  }
  func.func @transform_4(%arg0: i32) -> (i32, i32) {
    %c0_i32 = arith.constant 0 : i32
    %c0_i32_0 = arith.constant 0 : i32
    %c0_i32_1 = arith.constant 0 : i32
    return %c0_i32, %c0_i32_0 : i32, i32
  }
  func.func @transform_5(%arg0: i32) -> (i32, i32) {
    %c0_i32 = arith.constant 0 : i32
    %c0_i32_0 = arith.constant 0 : i32
    %c0_i32_1 = arith.constant 0 : i32
    return %c0_i32, %c0_i32_0 : i32, i32
  }
  func.func @transform_6(%arg0: i32) -> (i32, i32) {
    %c0_i32 = arith.constant 0 : i32
    %c0_i32_0 = arith.constant 0 : i32
    %c0_i32_1 = arith.constant 0 : i32
    return %c0_i32, %c0_i32_0 : i32, i32
  }
  func.func @transform_7(%arg0: i32) -> (i32, i32) {
    %c0_i32 = arith.constant 0 : i32
    %c0_i32_0 = arith.constant 0 : i32
    %c0_i32_1 = arith.constant 0 : i32
    return %c0_i32, %c0_i32_0 : i32, i32
  }
  func.func @transform_8(%arg0: i32) -> (i32, i32) {
    %c0_i32 = arith.constant 0 : i32
    %c0_i32_0 = arith.constant 0 : i32
    %c0_i32_1 = arith.constant 0 : i32
    return %c0_i32, %c0_i32_0 : i32, i32
  }
  func.func @transform_9(%arg0: i32) -> (i32, i32) {
    %c0_i32 = arith.constant 0 : i32
    %c0_i32_0 = arith.constant 0 : i32
    %c0_i32_1 = arith.constant 0 : i32
    return %c0_i32, %c0_i32_0 : i32, i32
  }
  func.func @transform_10(%arg0: i32) -> (i32, i32) {
    %c0_i32 = arith.constant 0 : i32
    %c0_i32_0 = arith.constant 0 : i32
    %c0_i32_1 = arith.constant 0 : i32
    return %c0_i32, %c0_i32_0 : i32, i32
  }
  func.func @transform_11(%arg0: i32) -> (i32, i32) {
    %c0_i32 = arith.constant 0 : i32
    %c0_i32_0 = arith.constant 0 : i32
    %c0_i32_1 = arith.constant 0 : i32
    return %c0_i32, %c0_i32_0 : i32, i32
  }
  func.func @transform_12(%arg0: i32) -> (i32, i32) {
    %c0_i32 = arith.constant 0 : i32
    %c0_i32_0 = arith.constant 0 : i32
    %c0_i32_1 = arith.constant 0 : i32
    return %c0_i32, %c0_i32_0 : i32, i32
  }
  func.func @transform_13(%arg0: i32) -> (i32, i32) {
    %c0_i32 = arith.constant 0 : i32
    %c0_i32_0 = arith.constant 0 : i32
    %c0_i32_1 = arith.constant 0 : i32
    return %c0_i32, %c0_i32_0 : i32, i32
  }
  func.func @transform_14(%arg0: i32) -> (i32, i32) {
    %c0_i32 = arith.constant 0 : i32
    %c0_i32_0 = arith.constant 0 : i32
    %c0_i32_1 = arith.constant 0 : i32
    return %c0_i32, %c0_i32_0 : i32, i32
  }
  func.func @transform_15(%arg0: i32) -> (i32, i32) {
    %c0_i32 = arith.constant 0 : i32
    %c0_i32_0 = arith.constant 0 : i32
    %c0_i32_1 = arith.constant 0 : i32
    return %c0_i32, %c0_i32_0 : i32, i32
  }
  func.func @transform_16(%arg0: i32) -> (i32, i32) {
    %c0_i32 = arith.constant 0 : i32
    %c0_i32_0 = arith.constant 0 : i32
    return %arg0, %c0_i32 : i32, i32
  }
}

</mosaic_0001>

<bundles_post_ra>
// kernel: tpu_custom_call.1
= control target key start
LH: loop header
LB: loop body
LE: loop exit
PB: predicated region body
PF: predicated region fallthrough
CT: control target
= control target key end

     0   :  { %s2848_s0 = inlined_call_operand.vmem [shape: f32[2,64,16], index: 0, kind: input, shape index: {}]   ;;  %s2849_s1 = inlined_call_operand.vmem [shape: f32[64,8], index: 1, kind: input, shape index: {}]   ;;  %s2850_s2 = inlined_call_operand.hbm [shape: bf16[16,128], index: 2, kind: input, shape index: {}]   ;;  %s2851_s3 = inlined_call_operand.vmem [shape: bf16[128,128], index: 3, kind: input, shape index: {}]   ;;  %s2852_s4 = inlined_call_operand.vmem [shape: bf16[128,128], index: 4, kind: input, shape index: {}]   ;;  %s2853_s5 = inlined_call_operand.vmem [shape: bf16[128,128], index: 5, kind: input, shape index: {}]   ;;  %s2854_s6 = inlined_call_operand.hbm [shape: bf16[128,128], index: 6, kind: input, shape index: {}]   ;;  %s2855_s7 = inlined_call_operand.vmem [shape: bf16[128,128], index: 7, kind: input, shape index: {}]   ;;  %s2856_s8 = inlined_call_operand.vmem [shape: bf16[8,128], index: 8, kind: input, shape index: {}]   ;;  %s2857_s9 = inlined_call_operand.hbm [shape: bf16[128,128], index: 9, kind: input, shape index: {}]   ;;  %s2858_s10 = inlined_call_operand.vmem [shape: f32[1,128], index: 10, kind: input, shape index: {}]   ;;  %s2859_s11 = inlined_call_operand.vmem [shape: f32[1,128], index: 11, kind: input, shape index: {}]   ;;  %s2860_s12 = inlined_call_operand.vmem [shape: f32[1,128], index: 12, kind: input, shape index: {}]   ;;  %s2861_s13 = inlined_call_operand.vmem [shape: f32[1,128], index: 13, kind: input, shape index: {}]   ;;  %s2862_s14 = inlined_call_operand.vmem [shape: f32[1,128], index: 14, kind: input, shape index: {}]   ;;  %s2863_s15 = inlined_call_operand.vmem [shape: f32[1,128], index: 15, kind: input, shape index: {}]   ;;  %s2864_s16 = inlined_call_operand.hbm [shape: bf16[64,384], index: 16, kind: output, shape index: {}]  }
   0x1   :  { %2876 = sst [smem:[#allocation18_spill]] %s2848_s0 }
   0x2   :  { %2877 = sst [smem:[#allocation19_spill]] %s2849_s1 }
   0x3   :  { %2878 = sst [smem:[#allocation20_spill]] %s2855_s7 }
   0x4   :  { %2879 = sst [smem:[#allocation21_spill]] %s2860_s12 }
   0x5   :  { %2880 = sst [smem:[#allocation22_spill]] %s2861_s13 }
   0x6   :  { %2881 = sst [smem:[#allocation23_spill]] %s2862_s14 }
   0x7   :  { %2882 = sst [smem:[#allocation24_spill]] %s2863_s15 }
   0x8   :  { %2883 = sst [smem:[#allocation25_spill]] %s2864_s16 }
   0x9   :  { %21 = vsyncpa [#allocation4], 0 }
   0xa   :  { %22 = vsyncpa [#allocation7], 0 }
   0xb   :  { %23 = vsyncpa [#allocation5], 0 }
   0xc   :  { %25 = vsyncpa [#allocation5 + $0x1], 0  ;;  %s2473_s21 = smov 0   ;;  %s2475_s22 = smov 0  }
   0xd   :  { %s2477_s23 = smov 0   ;;  %s2479_s24 = smov 0  }
   0xe LB: > { %2884 = sst [smem:[#allocation13_spill]] %s2366_s21  ;;  %s2494_s25 = sadd.s32 4294967295, %s2378_s24   ;;  %s2378_s24 = sphi %s2479_s24, %s2914_s24   ;;  %s2374_s23 = sphi %s2477_s23, %s2918_s23   ;;  %s2370_s22 = sphi %s2475_s22, %s2917_s22   ;;  %s2366_s21 = sphi %s2473_s21, %s2916_s21  }
   0xf   : > { %s1773_s26 = sadd.s32 4294967294, %s2378_s24   ;;  %s2498_s27 = sadd.s32 1, %s2378_s24  }
  0x10   : > { %2885 = sst [smem:[#allocation14_spill]] %s2498_s27  ;;  %s38_s28 = sadd.s32 1, %s2374_s23 }
  0x11   : > { %s35_s29 = ssub.s32 %s2378_s24, %s2498_s27  ;;  %p45_p0 = scmp.ne.s32.totalorder %s2374_s23, %s2370_s22 }
  0x12   : > { %p36_p1 = scmp.eq.s32.totalorder %s35_s29, 0  ;;  %p46_p2 = scmp.eq.s32.totalorder %s2378_s24, 0 }
  0x13   : > { %p395_p3 = scmp.eq.s32.totalorder %s2494_s25, 1  ;;  %p400_p4 = scmp.ne.s32.totalorder %s2370_s22, %s2366_s21 }
  0x14   : > { %s2510_s30 = scalar_select %p36_p1, %s2374_s23, %s38_s28  }
  0x15   : > { %p2512_p5 = por %p46_p2, %p45_p0  ;;  %p2516_p6 = por %p395_p3, %p45_p0 }
  0x16   : > { %2886 = sst [smem:[#allocation15_spill]] %s2510_s30  ;;  %p401_p7 = scmp.eq.s32.totalorder %s1773_s26, 1 }
  0x17   : > { %s2887_s0 = scalar_select %p2512_p5, 1, 0 }
  0x18   : > { %s2888_s17 = scalar_select %p2516_p6, 1, 0 }
  0x19   : > { %p1774_p8 = scmp.ge.s32.totalorder %s2378_s24, 1  ;;  %p408_p9 = scmp.lt.s32.totalorder %s2378_s24, 3 }
  0x1a   : > { %2889 = sst [smem:[#allocation16_spill]] %s2888_s17  ;;  %p2522_p10 = por %p401_p7, %p400_p4 }
  0x1b   : > { %p2872_p11 = scmp.eq.s32.totalorder %s2494_s25, 0  ;;  %p2527_p12 = pnand %p1774_p8, %p408_p9 }
  0x1c   : > { %s2890_s18 = scalar_select %p2522_p10, 1, 0 }
  0x1d   : > { %s2892_s19 = scalar_select %p2527_p12, 1, 0 }
  0x1e   : > { %2891 = sst [smem:[#allocation17_spill]] %s2890_s18  ;;  %p2115_p13 = pneg %p2527_p12 }
  0x1f   : > { %s2380_s20 = smov [#allocation6]   ;;  %s2381_s29 = smov [#allocation3]  }
  0x20   : > { %s442_s28 = sshll.u32 %s2380_s20, 4  ;;  %p2537_p0 = pnand %p2872_p11, %p2115_p13  ;;  %s2533_s28 = int_to_ptr.vmem [resolvable:$true] %s442_s28 }
  0x21   : > { %s420_s30 = sshll.u32 %s2381_s29, 4  ;;  %s2382_s27 = smov [#allocation8]   ;;  %s2541_s30 = int_to_ptr.vmem [resolvable:$true] %s420_s30 }
  0x22   : > { %s2543_s18 = sshll.u32 %s2382_s27, 4  ;;  %s2224_s17 = scalar_lea.hbm %s2854_s6, 1024  ;;  %s462_s18 = int_to_ptr.vmem [resolvable:$true] %s2543_s18 }
  0x23   : > { %p2225_p1 = scmp.ne.s32.totalorder %s2854_s6, %s2224_s17  ;;  %p2553_p2 = pneg %p2537_p0 }
  0x24   : > { %p2231_p7 = scmp.lt.u32.totalorder %s2224_s17, %s2854_s6 }
  0x25   : > { %p2227_p3 = pnand %p2553_p2, %p2225_p1 }
  0x27   : > { %p2228_p4 = pneg %p2227_p3 }
  0x29   : > { %p2233_p8 = pnand %p2231_p7, %p2228_p4 }
  0x2b   : > { %2236 = shalt.err (!%p2233_p8)
}
  0x2c   : > { %s2237_s15 = scalar_lea.vmem %s2533_s28, 1024  ;;  %p2245_p10 = scmp.lt.s32.totalorder %s2533_s28, %s2533_s28 }
  0x2d   : > { %p2238_p9 = scmp.ne.s32.totalorder %s2533_s28, %s2237_s15  ;;  %p2246_p6 = scmp.lt.s32.totalorder %s2237_s15, %s2237_s15 }
  0x2f   : > { %p2240_p13 = pnand %p2238_p9, %p2553_p2  ;;  %p2247_p1 = por %p2246_p6, %p2245_p10 }
  0x31   : > { %p2241_p11 = pneg %p2240_p13 }
  0x33   : > { %p2248_p3 = pnand %p2247_p1, %p2241_p11 }
  0x35   : > { %2251 = shalt.err (!%p2248_p3)
}
  0x36   : > { %s2383_s16 = smov 64   ;;  %s2384_s21 = smov 4  }
  0x37   : > { %2121 = dma.hbm_to_vmem [thread:$0]  (!%p2537_p0), %s2854_s6, 1024, %s2533_s28, [#allocation7], %s2383_s16, %s2383_s16, %s2384_s21  }
  0x38   : > { %s2252_s15 = scalar_lea.hbm %s2850_s2, 128 }
  0x39   : > { %p2253_p6 = scmp.ne.s32.totalorder %s2850_s2, %s2252_s15  ;;  %p2259_p4 = scmp.lt.u32.totalorder %s2252_s15, %s2850_s2 }
  0x3b   : > { %p2255_p10 = pnand %p2253_p6, %p2553_p2 }
  0x3d   : > { %p2256_p11 = pneg %p2255_p10 }
  0x3f   : > { %p2261_p7 = pnand %p2259_p4, %p2256_p11 }
  0x41   : > { %2264 = shalt.err (!%p2261_p7)
}
  0x42   : > { %s2265_s28 = scalar_lea.vmem %s2541_s30, 128  ;;  %p2273_p1 = scmp.lt.s32.totalorder %s2541_s30, %s2541_s30 }
  0x43   : > { %p2266_p8 = scmp.ne.s32.totalorder %s2541_s30, %s2265_s28  ;;  %p2274_p3 = scmp.lt.s32.totalorder %s2265_s28, %s2265_s28 }
  0x45   : > { %p2268_p9 = pnand %p2266_p8, %p2553_p2  ;;  %p2275_p6 = por %p2274_p3, %p2273_p1 }
  0x47   : > { %p2269_p13 = pneg %p2268_p9 }
  0x49   : > { %p2276_p10 = pnand %p2275_p6, %p2269_p13 }
  0x4b   : > { %2279 = shalt.err (!%p2276_p10)
}
  0x4c   : > { %2118 = dma.hbm_to_vmem [thread:$0]  (!%p2537_p0), %s2850_s2, 128, %s2541_s30, [#allocation4], %s2383_s16, %s2383_s16, %s2384_s21  }
  0x4d   : > { %s2280_s17 = scalar_lea.hbm %s2857_s9, 1024 }
  0x4e   : > { %p2281_p11 = scmp.ne.s32.totalorder %s2857_s9, %s2280_s17  ;;  %p2287_p8 = scmp.lt.u32.totalorder %s2280_s17, %s2857_s9 }
  0x50   : > { %p2283_p4 = pnand %p2281_p11, %p2553_p2 }
  0x52   : > { %p2284_p7 = pneg %p2283_p4 }
  0x54   : > { %p2289_p9 = pnand %p2287_p8, %p2284_p7 }
  0x56   : > { %2292 = shalt.err (!%p2289_p9)
}
  0x57   : > { %s2293_s28 = scalar_lea.vmem %s462_s18, 1024  ;;  %p2301_p6 = scmp.lt.s32.totalorder %s462_s18, %s462_s18 }
  0x58   : > { %p2294_p13 = scmp.ne.s32.totalorder %s462_s18, %s2293_s28  ;;  %p2302_p10 = scmp.lt.s32.totalorder %s2293_s28, %s2293_s28 }
  0x5a   : > { %p2296_p1 = pnand %p2294_p13, %p2553_p2  ;;  %p2303_p12 = por %p2302_p10, %p2301_p6 }
  0x5c   : > { %p2297_p3 = pneg %p2296_p1 }
  0x5e   : > { %p2304_p5 = pnand %p2303_p12, %p2297_p3 }
  0x60   : > { %2307 = shalt.err (!%p2304_p5)
}
  0x61   : > { %2124 = dma.hbm_to_vmem [thread:$0]  (!%p2537_p0), %s2857_s9, 1024, %s462_s18, [#allocation7], %s2383_s16, %s2383_s16, %s2384_s21  }
  0x62   : > { %p1778_p11 = scmp.ge.s32.totalorder %s2378_s24, 2 }
  0x63   : > { %p2895_p2 = scmp.ne.s32.totalorder (!%p1778_p11), %s2887_s0, 0 }
  0x64   : > { %489 = sbr.rel (%p1778_p11) target bundleno = 121 (0x79), region = 72 }
  0x6b   : > { %492 = sbr.rel (!%p2895_p2) target bundleno = 121 (0x79), region = 76  ;;  %s494_s14 = sand.u32 (%p2895_p2), 1, %s2374_s23  }
  0x6c   : > { %s1867_s7 = sshll.u32 (%p2895_p2), %s2378_s24, 5  ;;  %s1779_s26 = sshll.u32 (%p2895_p2), %s494_s14, 6 }
  0x6d   : > { %s2896_s17 = sld [smem:[#allocation18_spill]] (%p2895_p2)  ;;  %s496_s18 = scalar_lea.vmem (%p2895_p2), [#allocation2], %s1779_s26 }
  0x73   : > { %s499_s20 = scalar_lea.vmem %s2896_s17, %s1867_s7 }
  0x74   : > { %v541_v0 = vld [vmem:[%s499_s20] sm:$0xff]  ;;  %v543_v1 = vld [vmem:[%s499_s20 + $0x8] sm:$0xff]  ;;  %v545_v2 = vld [vmem:[%s499_s20 + $0x10] sm:$0xff] }
  0x75   : > { %542 = vst [vmem:[%s496_s18] sm:$0xff] %v541_v0  ;;  %544 = vst [vmem:[%s496_s18 + $0x8] sm:$0xff] %v543_v1  ;;  %v547_v3 = vld [vmem:[%s499_s20 + $0x18] sm:$0xff]  ;;  %v549_v4 = vld [vmem:[%s499_s20 + $0x40] sm:$0xff] }
  0x76   : > { %546 = vst [vmem:[%s496_s18 + $0x10] sm:$0xff] %v545_v2  ;;  %v551_v5 = vld [vmem:[%s499_s20 + $0x48] sm:$0xff]  ;;  %548 = vst [vmem:[%s496_s18 + $0x18] sm:$0xff] %v547_v3  ;;  %v553_v6 = vld [vmem:[%s499_s20 + $0x50] sm:$0xff] }
  0x77   : > { %550 = vst [vmem:[%s496_s18 + $0x20] sm:$0xff] %v549_v4  ;;  %552 = vst [vmem:[%s496_s18 + $0x28] sm:$0xff] %v551_v5  ;;  %v555_v7 = vld [vmem:[%s499_s20 + $0x58] sm:$0xff] }
  0x78   : > { %554 = vst [vmem:[%s496_s18 + $0x30] sm:$0xff] %v553_v6  ;;  %556 = vst [vmem:[%s496_s18 + $0x38] sm:$0xff] %v555_v7 }
  0x79 PF: > { %p2897_p5 = scmp.ne.s32.totalorder %s2892_s19, 0 }
  0x7a   : > { %s2638_s0 = sand.u32 (!%p2897_p5), 1, %s2370_s22   ;;  %p2898_p12 = scmp.eq.s32.totalorder (!%p2897_p5), %s2494_s25, 0 }
  0x7b   : > { %574 = sbr.rel (%p2897_p5) target bundleno = 1340 (0x53c), region = 118  ;;  %s1783_s16 = sshll.u32 (!%p2897_p5), %s2638_s0, 6 }
  0x7c   : > { %s579_s21 = scalar_lea.vmem (!%p2897_p5), [#allocation2], %s1783_s16 }
  0x82   : > { %2353 = dma.done.wait (%p2898_p12), [#allocation4], 128   ;;  %p2899_p0 = pmov %p2898_p12 }
  0x84   : > { %2355 = vsyncadd (%p2899_p0), [#allocation4], 4294967168  ;;  %p2900_p4 = pmov %p2899_p0 }
  0x85   : > { %p2901_p7 = pmov %p2899_p0 }
  0x86   : > { %2357 = dma.done.wait (%p2900_p4), [#allocation7], 2048  }
  0x87   : > { %2359 = vsyncadd (%p2901_p7), [#allocation7], 4294965248  ;;  %v2175_v8 = vld [vmem:[#allocation3] sm:$0xff]   ;;  %v653_v10 = vld [vmem:[%s579_s21 + $0x8] sm:$0xff]  ;;  %vm679_vm0 = vcmask 130048   ;;  %s2099_s28 = smul.u32 48, %s2638_s0 }
  0x88   : > { %v652_v9 = vld [vmem:[%s579_s21] sm:$0xff]  ;;  %v654_v11 = vld [vmem:[%s579_s21 + $0x10] sm:$0xff]  ;;  %1950 = vmatprep.subr.bf16.mxu0 %v2175_v8  ;;  %v655_v13 = vld [vmem:[%s579_s21 + $0x18] sm:$0xff]  ;;  %vm1340_vm1 = vcmask 1043456   ;;  %s1787_s1 = sshll.u32 %s2494_s25, 2  ;;  %s2902_s26 = sld [smem:[#allocation21_spill]] }
  0x89   : > { %v660_v12 = vpack.c.bf16 %v653_v10, %v652_v9  ;;  %v656_v14 = vld [vmem:[%s579_s21 + $0x20] sm:$0xff]  ;;  %v657_v15 = vld [vmem:[%s579_s21 + $0x28] sm:$0xff]  ;;  %1951 = vmatpush3.bf16.msra.mxu0 %v2175_v8  ;;  %v661_v16 = vpack.c.bf16 %v655_v13, %v654_v11  ;;  %v658_v20 = vld [vmem:[%s579_s21 + $0x30] sm:$0xff]  ;;  %s2715_s30 = scalar_lea.vmem [#allocation9], %s2099_s28  ;;  %p645_p8 = scmp.lt.s32.totalorder %s1787_s1, 7  ;;  %vm1333_vm2 = vcmask 64512  }
  0x8a   : > { %v662_v17 = vpack.c.bf16 %v657_v15, %v656_v14  ;;  %v2176_v18 = vld [vmem:[%s2851_s3] sm:$0xff]   ;;  %v2177_v19 = vld [vmem:[%s2851_s3 + $0x8] sm:$0xff]   ;;  %v659_v21 = vld [vmem:[%s579_s21 + $0x38] sm:$0xff]  ;;  %s2903_s20 = sld [smem:[#allocation19_spill]]  ;;  %s2904_s19 = sld [smem:[#allocation20_spill]] }
  0x8b   : > { %1952 = vmatprep.mubr.msk.bf16.mxu0 %vm679_vm0, %v660_v12  ;;  %1960 = vmatprep.subr.bf16.mxu1 %v2176_v18  ;;  %v2178_v22 = vld [vmem:[%s2851_s3 + $0x10] sm:$0xff]   ;;  %v663_v23 = vpack.c.bf16 %v659_v21, %v658_v20  ;;  %v2179_v24 = vld [vmem:[%s2851_s3 + $0x18] sm:$0xff]   ;;  %v2180_v25 = vld [vmem:[%s2851_s3 + $0x20] sm:$0xff]   ;;  %s2920_s1 = smov (!%p645_p8, %s1787_s1), 7  ;;  %s2905_s27 = sld [smem:[#allocation22_spill]] }
  0x8c   : > { %1953 = vmatmul.mubr.msk.bf16.vlgmr.msra.gmra.mrb[0].mxu0 %vm679_vm0, %v661_v16  ;;  %1961 = vmatpush3.bf16.msra.mxu1 %v2176_v18  ;;  %v2181_v26 = vld [vmem:[%s2851_s3 + $0x28] sm:$0xff]   ;;  %v2182_v27 = vld [vmem:[%s2851_s3 + $0x30] sm:$0xff]   ;;  %v2183_v28 = vld [vmem:[%s2851_s3 + $0x38] sm:$0xff]   ;;  %s1788_s12 = sshll.u32 %s2920_s1, 3  ;;  %s2906_s1 = sld [smem:[#allocation23_spill]] }
  0x8d   : > { %1956 = vmatprep.mubr.msk.bf16.mxu0 %vm679_vm0, %v662_v17  ;;  %1962 = vmatprep.subr.bf16.mxu1 %v2177_v19  ;;  %v2184_v29 = vld [vmem:[%s2853_s5] sm:$0xff]   ;;  %v2185_v30 = vld [vmem:[%s2853_s5 + $0x8] sm:$0xff]   ;;  %v2186_v31 = vld [vmem:[%s2853_s5 + $0x10] sm:$0xff]   ;;  %s1662_s13 = sshll.u32 %s2715_s30, 4  ;;  %s2908_s17 = sld [smem:[#allocation16_spill]]  ;;  %s2801_s13 = int_to_ptr.vmem [resolvable:$true] %s1662_s13 }
  0x8e   : > { %1984 = vmatprep.subr.bf16.mxu0 %v2184_v29  ;;  %v2187_v32 = vld [vmem:[%s2853_s5 + $0x18] sm:$0xff]   ;;  %v1789_v33 = vld [vmem:[%s2858_s10] ss:$0 sm:$0xff]  ;;  %v2189_v63 = vld [vmem:[%s2853_s5 + $0x28] sm:$0xff]   ;;  %s2909_s16 = sld [smem:[#allocation25_spill]]  ;;  %s2308_s29 = scalar_lea.vmem %s2801_s13, 768 }
  0x8f   : > { %1985 = vmatpush3.bf16.msra.mxu0 %v2184_v29  ;;  %v2188_v62 = vld [vmem:[%s2853_s5 + $0x20] sm:$0xff]   ;;  %v2190_v0 = vld [vmem:[%s2853_s5 + $0x30] sm:$0xff]   ;;  %v2191_v1 = vld [vmem:[%s2853_s5 + $0x38] sm:$0xff]   ;;  %p2309_p9 = scmp.ne.s32.totalorder %s2801_s13, %s2308_s29 }
  0x90   : > { %1963 = vmatpush3.bf16.msra.mxu1 %v2177_v19  ;;  %1986 = vmatprep.subr.bf16.mxu0 %v2185_v30  ;;  %v2192_v2 = vld [vmem:[%s2852_s4] sm:$0xff]   ;;  %v2200_v3 = vld [vmem:[#allocation6] sm:$0xff]   ;;  %v2201_v4 = vld [vmem:[#allocation6 + $0x8] sm:$0xff]   ;;  %s648_s18 = scalar_lea.vmem %s2903_s20, %s1788_s12  ;;  %s2100_s12 = smul.u32 768, %s2494_s25 }
  0x91   : > { %1964 = vmatprep.subr.bf16.mxu1 %v2178_v22  ;;  %v2202_v5 = vld [vmem:[#allocation6 + $0x10] sm:$0xff]   ;;  %v2203_v6 = vld [vmem:[#allocation6 + $0x18] sm:$0xff]   ;;  %v2204_v7 = vld [vmem:[#allocation6 + $0x20] sm:$0xff]   ;;  %s1648_s25 = scalar_lea.sflag [#allocation5], %s2638_s0 }
  0x92   : > { %v2205_v8 = vld [vmem:[#allocation6 + $0x28] sm:$0xff]   ;;  %v1795_v10 = vld [vmem:[%s2859_s11] ss:$0 sm:$0xff] }
  0x93   : > { %1987 = vmatpush3.bf16.msra.mxu0 %v2185_v30  ;;  %p2910_p13 = scmp.ne.s32.totalorder %s2908_s17, 0 }
  0x94   : > { %1957 = vmatmul.mubr.msk.bf16.gmra.mrb[4].mxu0 %vm679_vm0, %v663_v23  ;;  %1965 = vmatpush3.bf16.msra.mxu1 %v2178_v22  ;;  %s2799_s21 = scalar_lea.hbm %s2909_s16, %s2100_s12 }
  0x95   : > { %1966 = vmatprep.subr.bf16.mxu1 %v2179_v24  ;;  %1988 = vmatprep.subr.bf16.mxu0 %v2186_v31  ;;  %p2310_p1 = pnand %p2309_p9, %p2910_p13 }
  0x97   : > { %1989 = vmatpush3.bf16.msra.mxu0 %v2186_v31  ;;  %p2311_p3 = pneg %p2310_p1 }
  0x98   : > { %1967 = vmatpush3.bf16.msra.mxu1 %v2179_v24  ;;  %1990 = vmatprep.subr.bf16.mxu0 %v2187_v32 }
  0x99   : > { %1968 = vmatprep.subr.bf16.mxu1 %v2180_v25 }
  0x9b   : > { %1991 = vmatpush3.bf16.msra.mxu0 %v2187_v32 }
  0x9c   : > { %1969 = vmatpush3.bf16.msra.mxu1 %v2180_v25  ;;  %1992 = vmatprep.subr.bf16.mxu0 %v2188_v62 }
  0x9d   : > { %1970 = vmatprep.subr.bf16.mxu1 %v2181_v26 }
  0x9f   : > { %1993 = vmatpush3.bf16.msra.mxu0 %v2188_v62 }
  0xa0   : > { %1971 = vmatpush3.bf16.msra.mxu1 %v2181_v26  ;;  %1994 = vmatprep.subr.bf16.mxu0 %v2189_v63 }
  0xa1   : > { %1972 = vmatprep.subr.bf16.mxu1 %v2182_v27 }
  0xa3   : > { %1995 = vmatpush3.bf16.msra.mxu0 %v2189_v63  ;;  %v2208_v63 = vld [vmem:[%s2904_s19] sm:$0xff]  }
  0xa4   : > { %1973 = vmatpush3.bf16.msra.mxu1 %v2182_v27  ;;  %1996 = vmatprep.subr.bf16.mxu0 %v2190_v0 }
  0xa5   : > { %1974 = vmatprep.subr.bf16.mxu1 %v2183_v28 }
  0xa7   : > { %1997 = vmatpush3.bf16.msra.mxu0 %v2190_v0  ;;  %v929_v0 = vld [vmem:[%s648_s18 + $0x10] sm:$0xff] }
  0xa8   : > { %1975 = vmatpush3.bf16.msra.mxu1 %v2183_v28  ;;  %1998 = vmatprep.subr.bf16.mxu0 %v2191_v1 }
  0xa9   : > { %2024 = vmatprep.subr.bf16.mxu1 %v2200_v3 }
  0xab   : > { %1999 = vmatpush3.bf16.msra.mxu0 %v2191_v1  ;;  %v930_v1 = vld [vmem:[%s648_s18 + $0x18] sm:$0xff] }
  0xac   : > { %2004 = vmatprep.subr.bf16.mxu0 %v2192_v2 }
 0x15f   : > { %v1954_v34 = vpop.f32.mrb[0].mxu0 }
 0x160   : > { %v735_v35 = vadd.f32 %v1954_v34, %v1789_v33  ;;  %v726_v36 = vpop.f32.mrb[1].mxu0  ;;  %v2193_v34 = vld [vmem:[%s2852_s4 + $0x8] sm:$0xff]  }
 0x161   : > { %v727_v37 = vadd.f32 %v1789_v33, %v726_v36  ;;  %v1955_v38 = vpop.f32.mrb[2].mxu0  ;;  %v2195_v36 = vld [vmem:[%s2852_s4 + $0x18] sm:$0xff]  }
 0x162   : > { %v738_v39 = vadd.f32 %v1955_v38, %v1789_v33  ;;  %v729_v40 = vpop.f32.mrb[3].mxu0  ;;  %v759_v42 = vmax.f32 %v735_v35, 0.0  ;;  %v2194_v35 = vld [vmem:[%s2852_s4 + $0x10] sm:$0xff]   ;;  %v2197_v38 = vld [vmem:[%s2852_s4 + $0x28] sm:$0xff]  }
 0x163   : > { %v730_v41 = vadd.f32 %v1789_v33, %v729_v40  ;;  %v757_v44 = vmax.f32 %v727_v37, 0.0  ;;  %v2196_v37 = vld [vmem:[%s2852_s4 + $0x20] sm:$0xff]   ;;  %v2199_v40 = vld [vmem:[%s2852_s4 + $0x38] sm:$0xff]  }
 0x164   : > { %v760_v43 = vmax.f32 %v738_v39, 0.0  ;;  %v2198_v39 = vld [vmem:[%s2852_s4 + $0x30] sm:$0xff]  }
 0x165   : > { %v758_v45 = vmax.f32 %v730_v41, 0.0  ;;  %v2206_v41 = vld [vmem:[#allocation6 + $0x30] sm:$0xff]  }
 0x166   : > { %v766_v46 = vpack.c.bf16 %v760_v43, %v759_v42  ;;  %v2207_v42 = vld [vmem:[#allocation6 + $0x38] sm:$0xff]  }
 0x167   : > { %v1958_v47 = vpop.f32.mrb[4].mxu0  ;;  %v765_v48 = vpack.c.bf16 %v758_v45, %v757_v44  ;;  %v1332_v43 = vld [vmem:[%s2856_s8] sm:$0xf] }
 0x168   : > { %v751_v49 = vadd.f32 %v1958_v47, %v1789_v33  ;;  %v742_v50 = vpop.f32.mrb[5].mxu0  ;;  %v1342_v44 = vsel %vm1340_vm1, %v1332_v43, 0  ;;  %v1824_v45 = vld [vmem:[%s2902_s26] ss:$0 sm:$0xff]  ;;  %s2907_s26 = sld [smem:[#allocation24_spill]] }
 0x169   : > { %v743_v51 = vadd.f32 %v1789_v33, %v742_v50  ;;  %v1959_v52 = vpop.f32.mrb[6].mxu0  ;;  %1976 = vmatprep.mubr.bf16.mxu1 %v765_v48 }
 0x16a   : > { %v754_v53 = vadd.f32 %v1959_v52, %v1789_v33  ;;  %v745_v54 = vpop.f32.mrb[7].mxu0  ;;  %1977 = vmatmul.mubr.bf16.vlgmr.msra.gmra.mrb[0].mxu1 %v766_v46  ;;  %v763_v56 = vmax.f32 %v751_v49, 0.0 }
 0x16b   : > { %v746_v55 = vadd.f32 %v1789_v33, %v745_v54  ;;  %v761_v58 = vmax.f32 %v743_v51, 0.0  ;;  %2025 = vmatpush3.bf16.msra.mxu1 %v2200_v3  ;;  %v2209_v3 = vld [vmem:[%s2904_s19 + $0x8] sm:$0xff]  }
 0x16c   : > { %v764_v57 = vmax.f32 %v754_v53, 0.0  ;;  %2026 = vmatprep.subr.bf16.mxu1 %v2201_v4 }
 0x16d   : > { %v762_v59 = vmax.f32 %v746_v55, 0.0 }
 0x16e   : > { %v768_v60 = vpack.c.bf16 %v764_v57, %v763_v56  ;;  %v927_v56 = vld [vmem:[%s648_s18] sm:$0xff]  ;;  %v928_v57 = vld [vmem:[%s648_s18 + $0x8] sm:$0xff] }
 0x16f   : > { %v767_v61 = vpack.c.bf16 %v762_v59, %v761_v58  ;;  %2027 = vmatpush3.bf16.msra.mxu1 %v2201_v4  ;;  %v931_v62 = vpack.c.bf16 %v928_v57, %v927_v56  ;;  %v2210_v4 = vld [vmem:[%s2904_s19 + $0x10] sm:$0xff]  }
 0x170   : > { %2028 = vmatprep.subr.bf16.mxu1 %v2202_v5 }
 0x171   : > { %1980 = vmatprep.mubr.bf16.mxu1 %v767_v61 }
 0x172   : > { %1981 = vmatmul.mubr.bf16.gmra.mrb[4].mxu1 %v768_v60 }
 0x173   : > { %2029 = vmatpush3.bf16.msra.mxu1 %v2202_v5  ;;  %v2211_v5 = vld [vmem:[%s2904_s19 + $0x18] sm:$0xff]  }
 0x174   : > { %2030 = vmatprep.subr.bf16.mxu1 %v2203_v6 }
 0x177   : > { %2031 = vmatpush3.bf16.msra.mxu1 %v2203_v6  ;;  %v2212_v6 = vld [vmem:[%s2904_s19 + $0x20] sm:$0xff]  }
 0x178   : > { %2032 = vmatprep.subr.bf16.mxu1 %v2204_v7 }
 0x17b   : > { %2033 = vmatpush3.bf16.msra.mxu1 %v2204_v7  ;;  %v2213_v7 = vld [vmem:[%s2904_s19 + $0x28] sm:$0xff]  }
 0x17c   : > { %2034 = vmatprep.subr.bf16.mxu1 %v2205_v8 }
 0x17f   : > { %2035 = vmatpush3.bf16.msra.mxu1 %v2205_v8  ;;  %v2214_v8 = vld [vmem:[%s2904_s19 + $0x30] sm:$0xff]  }
 0x180   : > { %2036 = vmatprep.subr.bf16.mxu1 %v2206_v41 }
 0x183   : > { %2037 = vmatpush3.bf16.msra.mxu1 %v2206_v41 }
 0x184   : > { %2038 = vmatprep.subr.bf16.mxu1 %v2207_v42 }
 0x187   : > { %2039 = vmatpush3.bf16.msra.mxu1 %v2207_v42 }
 0x188   : > { %2098 = vmatprep.subr.msk.bf16.mxu1 %vm1340_vm1, %v1332_v43 }
 0x23d   : > { %v1978_v9 = vpop.f32.mrb[0].mxu1 }
 0x23e   : > { %v874_v11 = vpop.f32.mrb[1].mxu1  ;;  %v883_v13 = vadd.f32 %v1978_v9, %v1795_v10  ;;  %v2215_v9 = vld [vmem:[%s2904_s19 + $0x38] sm:$0xff]  }
 0x23f   : > { %v1979_v12 = vpop.f32.mrb[2].mxu1  ;;  %v875_v16 = vadd.f32 %v1795_v10, %v874_v11  ;;  %v2217_v11 = vld [vmem:[#allocation8 + $0x8] sm:$0xff]  }
 0x240   : > { %v886_v14 = vadd.f32 %v1979_v12, %v1795_v10  ;;  %v877_v15 = vpop.f32.mrb[3].mxu1  ;;  %v2218_v12 = vld [vmem:[#allocation8 + $0x10] sm:$0xff]  }
 0x241   : > { %v878_v17 = vadd.f32 %v1795_v10, %v877_v15  ;;  %v2221_v15 = vld [vmem:[#allocation8 + $0x28] sm:$0xff]  }
 0x242   : > { %v2710_v18 = vpack.c.bf16 %v886_v14, %v883_v13  ;;  %v2219_v13 = vld [vmem:[#allocation8 + $0x18] sm:$0xff]   ;;  %v2220_v14 = vld [vmem:[#allocation8 + $0x20] sm:$0xff]  }
 0x243   : > { %v2712_v19 = vpack.c.bf16 %v878_v17, %v875_v16  ;;  %v2222_v16 = vld [vmem:[#allocation8 + $0x30] sm:$0xff]   ;;  %v2223_v17 = vld [vmem:[#allocation8 + $0x38] sm:$0xff]  }
 0x245   : > { %v1982_v20 = vpop.f32.mrb[4].mxu1 }
 0x246   : > { %v899_v21 = vadd.f32 %v1982_v20, %v1795_v10  ;;  %v890_v22 = vpop.f32.mrb[5].mxu1 }
 0x247   : > { %v891_v23 = vadd.f32 %v1795_v10, %v890_v22  ;;  %v1983_v24 = vpop.f32.mrb[6].mxu1 }
 0x248   : > { %v1870_v25 = vpack.c.bf16 %v899_v21, %v899_v21  ;;  %v902_v26 = vadd.f32 %v1983_v24, %v1795_v10  ;;  %v893_v27 = vpop.f32.mrb[7].mxu1 }
 0x249   : > { %v1868_v28 = vpack.c.bf16 %v891_v23, %v891_v23  ;;  %v894_v29 = vadd.f32 %v1795_v10, %v893_v27  ;;  %v2216_v10 = vld [vmem:[#allocation8] sm:$0xff]  }
 0x24a   : > { %923 = vst [vmem:[%s2715_s30 + $0x20] sm:$0xf] %v1870_v25  ;;  %v906_v30 = vpack.c.bf16 %v902_v26, %v899_v21  ;;  %v1871_v31 = vpack.c.bf16 %v902_v26, %v902_v26 }
 0x24b   : > { %921 = vst [vmem:[%s2715_s30 + $0x8] sm:$0xf] %v1868_v28  ;;  %v905_v32 = vpack.c.bf16 %v894_v29, %v891_v23  ;;  %v1869_v33 = vpack.c.bf16 %v894_v29, %v894_v29 }
 0x24c   : > { %924 = vst [vmem:[%s2715_s30 + $0x2c] sm:$0xf] %v1871_v31  ;;  %v1848_v31 = vld [vmem:[%s2906_s1] ss:$0 sm:$0xff] }
 0x24d   : > { %922 = vst [vmem:[%s2715_s30 + $0x14] sm:$0xf] %v1869_v33  ;;  %2000 = vmatprep.mubr.bf16.mxu0 %v905_v32 }
 0x24e   : > { %2001 = vmatmul.mubr.bf16.vlgmr.msra.gmra.mrb[8].mxu0 %v906_v30 }
 0x24f   : > { %2005 = vmatpush3.bf16.msra.mxu0 %v2192_v2  ;;  %2020 = vmatprep.mubr.bf16.mxu0 %v2712_v19  ;;  %v932_v2 = vpack.c.bf16 %v930_v1, %v929_v0 }
 0x250   : > { %2006 = vmatprep.subr.bf16.mxu0 %v2193_v34 }
 0x253   : > { %2007 = vmatpush3.bf16.msra.mxu0 %v2193_v34 }
 0x254   : > { %2008 = vmatprep.subr.bf16.mxu0 %v2194_v35 }
 0x257   : > { %2009 = vmatpush3.bf16.msra.mxu0 %v2194_v35 }
 0x258   : > { %2010 = vmatprep.subr.bf16.mxu0 %v2195_v36 }
 0x25b   : > { %2011 = vmatpush3.bf16.msra.mxu0 %v2195_v36 }
 0x25c   : > { %2012 = vmatprep.subr.bf16.mxu0 %v2196_v37 }
 0x25f   : > { %2013 = vmatpush3.bf16.msra.mxu0 %v2196_v37 }
 0x260   : > { %2014 = vmatprep.subr.bf16.mxu0 %v2197_v38 }
 0x263   : > { %2015 = vmatpush3.bf16.msra.mxu0 %v2197_v38 }
 0x264   : > { %2016 = vmatprep.subr.bf16.mxu0 %v2198_v39 }
 0x267   : > { %2017 = vmatpush3.bf16.msra.mxu0 %v2198_v39 }
 0x268   : > { %2018 = vmatprep.subr.bf16.mxu0 %v2199_v40 }
 0x26b   : > { %2019 = vmatpush3.bf16.msra.mxu0 %v2199_v40 }
 0x26c   : > { %2070 = vmatprep.subr.bf16.mxu0 %v2216_v10 }
 0x26e   : > { %2021 = vmatmul.mubr.bf16.vlgmr.msra.gmra.mrb[8].mxu0 %v2710_v18 }
 0x26f   : > { %2071 = vmatpush3.bf16.msra.mxu0 %v2216_v10 }
 0x270   : > { %2072 = vmatprep.subr.bf16.mxu0 %v2217_v11 }
 0x273   : > { %2073 = vmatpush3.bf16.msra.mxu0 %v2217_v11 }
 0x274   : > { %2074 = vmatprep.subr.bf16.mxu0 %v2218_v12 }
 0x277   : > { %2075 = vmatpush3.bf16.msra.mxu0 %v2218_v12 }
 0x278   : > { %2076 = vmatprep.subr.bf16.mxu0 %v2219_v13 }
 0x27b   : > { %2077 = vmatpush3.bf16.msra.mxu0 %v2219_v13 }
 0x27c   : > { %2078 = vmatprep.subr.bf16.mxu0 %v2220_v14 }
 0x27f   : > { %2079 = vmatpush3.bf16.msra.mxu0 %v2220_v14 }
 0x280   : > { %2080 = vmatprep.subr.bf16.mxu0 %v2221_v15 }
 0x283   : > { %2081 = vmatpush3.bf16.msra.mxu0 %v2221_v15 }
 0x284   : > { %2082 = vmatprep.subr.bf16.mxu0 %v2222_v16 }
 0x287   : > { %2083 = vmatpush3.bf16.msra.mxu0 %v2222_v16 }
 0x288   : > { %2084 = vmatprep.subr.bf16.mxu0 %v2223_v17 }
 0x28b   : > { %2085 = vmatpush3.bf16.msra.mxu0 %v2223_v17 }
 0x341   : > { %v2022_v46 = vpop.f32.mrb[8].mxu0 }
 0x342   : > { %v1168_v47 = vadd.f32 %v2022_v46, %v1824_v45  ;;  %v1144_v48 = vpop.f32.mrb[9].mxu0  ;;  %v1849_v46 = vld [vmem:[%s2907_s26] ss:$0 sm:$0xff] }
 0x343   : > { %v1166_v49 = vadd.f32 %v1824_v45, %v1144_v48  ;;  %v2023_v50 = vpop.f32.mrb[10].mxu0 }
 0x344   : > { %v1169_v51 = vadd.f32 %v2023_v50, %v1824_v45  ;;  %v1147_v52 = vpop.f32.mrb[11].mxu0  ;;  %v1172_v54 = vmax.f32 %v1168_v47, 0.0 }
 0x345   : > { %v1167_v53 = vadd.f32 %v1824_v45, %v1147_v52  ;;  %v1170_v58 = vmax.f32 %v1166_v49, 0.0 }
 0x346   : > { %v1173_v55 = vmax.f32 %v1169_v51, 0.0 }
 0x347   : > { %v1171_v59 = vmax.f32 %v1167_v53, 0.0 }
 0x348   : > { %v1175_v60 = vpack.c.bf16 %v1173_v55, %v1172_v54 }
 0x349   : > { %v1174_v61 = vpack.c.bf16 %v1171_v59, %v1170_v58 }
 0x34b   : > { %2040 = vmatprep.mubr.bf16.mxu1 %v1174_v61 }
 0x34c   : > { %2041 = vmatmul.mubr.bf16.vlgmr.msra.gmra.mrb[8].mxu1 %v1175_v60 }
 0x34d   : > { %2045 = vmatpush3.bf16.msra.mxu1 %v1342_v44  ;;  %2046 = vmatprep.mubr.msk.bf16.mxu1 %vm1333_vm2, %v931_v62 }
 0x34e   : > { %2050 = vmatprep.subr.bf16.mxu1 %v2208_v63 }
 0x354   : > { %2047 = vmatmul.mubr.msk.bf16.vlgmr.msra.gmra.mrb[12].mxu1 %vm1333_vm2, %v932_v2 }
 0x355   : > { %2051 = vmatpush3.bf16.msra.mxu1 %v2208_v63  ;;  %2066 = vmatprep.mubr.bf16.mxu1 %v2712_v19 }
 0x356   : > { %2052 = vmatprep.subr.bf16.mxu1 %v2209_v3 }
 0x359   : > { %2053 = vmatpush3.bf16.msra.mxu1 %v2209_v3 }
 0x35a   : > { %2054 = vmatprep.subr.bf16.mxu1 %v2210_v4 }
 0x35d   : > { %2055 = vmatpush3.bf16.msra.mxu1 %v2210_v4 }
 0x35e   : > { %2056 = vmatprep.subr.bf16.mxu1 %v2211_v5 }
 0x361   : > { %2057 = vmatpush3.bf16.msra.mxu1 %v2211_v5 }
 0x362   : > { %2058 = vmatprep.subr.bf16.mxu1 %v2212_v6 }
 0x365   : > { %2059 = vmatpush3.bf16.msra.mxu1 %v2212_v6 }
 0x366   : > { %2060 = vmatprep.subr.bf16.mxu1 %v2213_v7 }
 0x369   : > { %2061 = vmatpush3.bf16.msra.mxu1 %v2213_v7 }
 0x36a   : > { %2062 = vmatprep.subr.bf16.mxu1 %v2214_v8 }
 0x36d   : > { %2063 = vmatpush3.bf16.msra.mxu1 %v2214_v8 }
 0x36e   : > { %2064 = vmatprep.subr.bf16.mxu1 %v2215_v9 }
 0x371   : > { %2065 = vmatpush3.bf16.msra.mxu1 %v2215_v9 }
 0x374   : > { %2067 = vmatmul.mubr.bf16.vlgmr.msra.gmra.mrb[12].mxu1 %v2710_v18  ;;  %v1825_v18 = vld [vmem:[%s2905_s27] ss:$0 sm:$0xff]  ;;  %s2385_s27 = smov [#allocation9]  }
 0x375   : > { %s2312_s15 = sshll.u32 %s2385_s27, 4  ;;  %s2313_s15 = int_to_ptr.vmem [resolvable:$false] %s2312_s15 }
 0x376   : > { %s2314_s28 = scalar_lea.vmem %s2313_s15, 1536  ;;  %p2315_p6 = scmp.lt.s32.totalorder %s2801_s13, %s2313_s15 }
 0x377   : > { %p2316_p10 = scmp.lt.s32.totalorder %s2314_s28, %s2308_s29 }
 0x379   : > { %p2317_p2 = por %p2316_p10, %p2315_p6 }
 0x37b   : > { %p2318_p5 = pnand %p2317_p2, %p2311_p3 }
 0x41f   : > { %v2042_v19 = vpop.f32.mrb[8].mxu1 }
 0x420   : > { %v1290_v20 = vadd.f32 %v2042_v19, %v1825_v18  ;;  %v1281_v21 = vpop.f32.mrb[9].mxu1 }
 0x421   : > { %v1282_v22 = vadd.f32 %v1825_v18, %v1281_v21  ;;  %v2043_v23 = vpop.f32.mrb[10].mxu1 }
 0x422   : > { %v1874_v24 = vpack.c.bf16 %v1290_v20, %v1290_v20  ;;  %v1293_v25 = vadd.f32 %v2043_v23, %v1825_v18  ;;  %v1284_v26 = vpop.f32.mrb[11].mxu1 }
 0x423   : > { %v1872_v27 = vpack.c.bf16 %v1282_v22, %v1282_v22  ;;  %v1285_v28 = vadd.f32 %v1825_v18, %v1284_v26 }
 0x424   : > { %1314 = vst [vmem:[%s2715_s30 + $0x18] sm:$0xf] %v1874_v24  ;;  %v1875_v29 = vpack.c.bf16 %v1293_v25, %v1293_v25 }
 0x425   : > { %1312 = vst [vmem:[%s2715_s30] sm:$0xf] %v1872_v27  ;;  %v1873_v30 = vpack.c.bf16 %v1285_v28, %v1285_v28 }
 0x426   : > { %1315 = vst [vmem:[%s2715_s30 + $0x24] sm:$0xf] %v1875_v29 }
 0x427   : > { %1313 = vst [vmem:[%s2715_s30 + $0xc] sm:$0xf] %v1873_v30 }
 0x447   : > { %v2068_v32 = vpop.f32.mrb[12].mxu1 }
 0x448   : > { %v1499_v33 = vadd.f32 %v2068_v32, %v1848_v31  ;;  %v1475_v34 = vpop.f32.mrb[13].mxu1 }
 0x449   : > { %v1497_v35 = vadd.f32 %v1848_v31, %v1475_v34  ;;  %v2069_v36 = vpop.f32.mrb[14].mxu1 }
 0x44a   : > { %v1500_v37 = vadd.f32 %v2069_v36, %v1848_v31  ;;  %v1478_v38 = vpop.f32.mrb[15].mxu1  ;;  %v1503_v40 = vmax.f32 %v1499_v33, 0.0 }
 0x44b   : > { %v1498_v39 = vadd.f32 %v1848_v31, %v1478_v38  ;;  %v1501_v42 = vmax.f32 %v1497_v35, 0.0 }
 0x44c   : > { %v1504_v41 = vmax.f32 %v1500_v37, 0.0 }
 0x44d   : > { %v1502_v43 = vmax.f32 %v1498_v39, 0.0 }
 0x44e   : > { %v1506_v44 = vpack.c.bf16 %v1504_v41, %v1503_v40 }
 0x44f   : > { %v1505_v45 = vpack.c.bf16 %v1502_v43, %v1501_v42 }
 0x451   : > { %2086 = vmatprep.mubr.bf16.mxu0 %v1505_v45 }
 0x452   : > { %2087 = vmatmul.mubr.bf16.vlgmr.msra.gmra.mrb[12].mxu0 %v1506_v44 }
 0x525   : > { %v2088_v47 = vpop.f32.mrb[12].mxu0 }
 0x526   : > { %v1621_v48 = vadd.f32 %v2088_v47, %v1849_v46  ;;  %v1612_v49 = vpop.f32.mrb[13].mxu0 }
 0x527   : > { %v1613_v50 = vadd.f32 %v1849_v46, %v1612_v49  ;;  %v2089_v51 = vpop.f32.mrb[14].mxu0 }
 0x528   : > { %v1878_v52 = vpack.c.bf16 %v1621_v48, %v1621_v48  ;;  %v1624_v53 = vadd.f32 %v2089_v51, %v1849_v46  ;;  %v1615_v54 = vpop.f32.mrb[15].mxu0 }
 0x529   : > { %v1876_v55 = vpack.c.bf16 %v1613_v50, %v1613_v50  ;;  %v1616_v56 = vadd.f32 %v1849_v46, %v1615_v54 }
 0x52a   : > { %1645 = vst [vmem:[%s2715_s30 + $0x1c] sm:$0xf] %v1878_v52  ;;  %v1879_v57 = vpack.c.bf16 %v1624_v53, %v1624_v53 }
 0x52b   : > { %1643 = vst [vmem:[%s2715_s30 + $0x4] sm:$0xf] %v1876_v55  ;;  %v1877_v58 = vpack.c.bf16 %v1616_v56, %v1616_v56 }
 0x52c   : > { %1646 = vst [vmem:[%s2715_s30 + $0x28] sm:$0xf] %v1879_v57 }
 0x52d   : > { %1644 = vst [vmem:[%s2715_s30 + $0x10] sm:$0xf] %v1877_v58 }
 0x52e   : > { %2321 = shalt.err (!%p2318_p5)
}
 0x52f   : > { %s2322_s30 = scalar_lea.hbm %s2799_s21, 768  ;;  %s2326_s7 = scalar_lea.hbm %s2909_s16, 1536 }
 0x530   : > { %p2323_p12 = scmp.ne.s32.totalorder %s2799_s21, %s2322_s30  ;;  %p2327_p7 = scmp.lt.u32.totalorder %s2799_s21, %s2909_s16 }
 0x531   : > { %p2328_p8 = scmp.lt.u32.totalorder %s2326_s7, %s2322_s30  ;;  %p2330_p1 = scmp.lt.u32.totalorder %s2322_s30, %s2799_s21 }
 0x532   : > { %p2324_p0 = pnand %p2323_p12, %p2910_p13 }
 0x533   : > { %p2329_p9 = por %p2328_p8, %p2327_p7 }
 0x534   : > { %p2325_p4 = pneg %p2324_p0 }
 0x535   : > { %p2331_p3 = por %p2330_p1, %p2329_p9 }
 0x537   : > { %p2332_p6 = pnand %p2331_p3, %p2325_p4 }
 0x539   : > { %2335 = shalt.err (!%p2332_p6)
}
 0x53a   : > { %s2386_s20 = smov 192   ;;  %s2387_s18 = smov 12  }
 0x53b   : > { %2113 = dma.vmem_to_hbm [thread:$0]  (%p2910_p13), %s2801_s13, 768, %s2799_s21, %s1648_s25, %s2386_s20, %s2386_s20, %s2387_s18  }
 0x53c PF: > { %s2911_s29 = sld [smem:[#allocation13_spill]]  ;;  %s2912_s27 = sld [smem:[#allocation17_spill]] }
 0x542   : > { %s1677_s15 = sand.u32 1, %s2911_s29   ;;  %p2913_p10 = scmp.ne.s32.totalorder %s2912_s27, 0 }
 0x543   : > { %s1678_s28 = scalar_lea.sflag [#allocation5], %s1677_s15 }
 0x544   : > { %p2126_p2 = pnand %p1778_p11, %p2913_p10 }
 0x546   : > { %2361 = dma.done.wait (!%p2126_p2), %s1678_s28, 768  }
 0x547   : > { %2363 = vsyncadd (!%p2126_p2), %s1678_s28, 4294966528  ;;  %s2914_s24 = sld [smem:[#allocation14_spill]]  ;;  %s2915_s30 = sld [smem:[#allocation15_spill]] }
 0x548   : > { %s2916_s21 = smov %s2370_s22  ;;  %s2917_s22 = smov %s2374_s23 }
 0x54d   : > { %p28_p5 = scmp.ge.s32.totalorder %s2914_s24, 4   ;;  %s2918_s23 = smov %s2915_s30 }
 0x54f   :  { %30 = sbr.rel (!%p28_p5) target bundleno = 14 (0xe), region = 178 }
 0x556   :  { %1683 = vsyncpa [#allocation4], 1 }
 0x557   :  { %1685 = vsyncpa [#allocation4 + $0x1], 1 }
 0x558   :  { %1686 = vsyncpa [#allocation7], 1 }
 0x559   :  { %1687 = vsyncpa [#allocation5], 1 }
 0x55a   :  { %1689 = vsyncpa [#allocation5 + $0x1], 1 }

// kernel: tpu_custom_call.1
= control target key start
LH: loop header
LB: loop body
LE: loop exit
PB: predicated region body
PF: predicated region fallthrough
CT: control target
= control target key end

     0   :  { %s2848_s0 = inlined_call_operand.vmem [shape: f32[2,64,16], index: 0, kind: input, shape index: {}]   ;;  %s2849_s1 = inlined_call_operand.vmem [shape: f32[64,8], index: 1, kind: input, shape index: {}]   ;;  %s2850_s2 = inlined_call_operand.hbm [shape: bf16[16,128], index: 2, kind: input, shape index: {}]   ;;  %s2851_s3 = inlined_call_operand.vmem [shape: bf16[128,128], index: 3, kind: input, shape index: {}]   ;;  %s2852_s4 = inlined_call_operand.vmem [shape: bf16[128,128], index: 4, kind: input, shape index: {}]   ;;  %s2853_s5 = inlined_call_operand.vmem [shape: bf16[128,128], index: 5, kind: input, shape index: {}]   ;;  %s2854_s6 = inlined_call_operand.hbm [shape: bf16[128,128], index: 6, kind: input, shape index: {}]   ;;  %s2855_s7 = inlined_call_operand.vmem [shape: bf16[128,128], index: 7, kind: input, shape index: {}]   ;;  %s2856_s8 = inlined_call_operand.vmem [shape: bf16[8,128], index: 8, kind: input, shape index: {}]   ;;  %s2857_s9 = inlined_call_operand.hbm [shape: bf16[128,128], index: 9, kind: input, shape index: {}]   ;;  %s2858_s10 = inlined_call_operand.vmem [shape: f32[1,128], index: 10, kind: input, shape index: {}]   ;;  %s2859_s11 = inlined_call_operand.vmem [shape: f32[1,128], index: 11, kind: input, shape index: {}]   ;;  %s2860_s12 = inlined_call_operand.vmem [shape: f32[1,128], index: 12, kind: input, shape index: {}]   ;;  %s2861_s13 = inlined_call_operand.vmem [shape: f32[1,128], index: 13, kind: input, shape index: {}]   ;;  %s2862_s14 = inlined_call_operand.vmem [shape: f32[1,128], index: 14, kind: input, shape index: {}]   ;;  %s2863_s15 = inlined_call_operand.vmem [shape: f32[1,128], index: 15, kind: input, shape index: {}]   ;;  %s2864_s16 = inlined_call_operand.hbm [shape: bf16[64,384], index: 16, kind: output, shape index: {}]  }
   0x1   :  { %2876 = sst [smem:[#allocation18_spill]] %s2848_s0 }
   0x2   :  { %2877 = sst [smem:[#allocation19_spill]] %s2849_s1 }
   0x3   :  { %2878 = sst [smem:[#allocation20_spill]] %s2855_s7 }
   0x4   :  { %2879 = sst [smem:[#allocation21_spill]] %s2860_s12 }
   0x5   :  { %2880 = sst [smem:[#allocation22_spill]] %s2861_s13 }
   0x6   :  { %2881 = sst [smem:[#allocation23_spill]] %s2862_s14 }
   0x7   :  { %2882 = sst [smem:[#allocation24_spill]] %s2863_s15 }
   0x8   :  { %2883 = sst [smem:[#allocation25_spill]] %s2864_s16 }
   0x9   :  { %21 = vsyncpa [#allocation4], 0 }
   0xa   :  { %22 = vsyncpa [#allocation7], 0 }
   0xb   :  { %23 = vsyncpa [#allocation5], 0 }
   0xc   :  { %25 = vsyncpa [#allocation5 + $0x1], 0  ;;  %s2473_s21 = smov 0   ;;  %s2475_s22 = smov 0  }
   0xd   :  { %s2477_s23 = smov 0   ;;  %s2479_s24 = smov 0  }
   0xe LB: > { %2884 = sst [smem:[#allocation13_spill]] %s2366_s21  ;;  %s2494_s25 = sadd.s32 4294967295, %s2378_s24   ;;  %s2378_s24 = sphi %s2479_s24, %s2914_s24   ;;  %s2374_s23 = sphi %s2477_s23, %s2918_s23   ;;  %s2370_s22 = sphi %s2475_s22, %s2917_s22   ;;  %s2366_s21 = sphi %s2473_s21, %s2916_s21  }
   0xf   : > { %s1773_s26 = sadd.s32 4294967294, %s2378_s24   ;;  %s2498_s27 = sadd.s32 1, %s2378_s24  }
  0x10   : > { %2885 = sst [smem:[#allocation14_spill]] %s2498_s27  ;;  %s38_s28 = sadd.s32 1, %s2374_s23 }
  0x11   : > { %s35_s29 = ssub.s32 %s2378_s24, %s2498_s27  ;;  %p45_p0 = scmp.ne.s32.totalorder %s2374_s23, %s2370_s22 }
  0x12   : > { %p36_p1 = scmp.eq.s32.totalorder %s35_s29, 0  ;;  %p46_p2 = scmp.eq.s32.totalorder %s2378_s24, 0 }
  0x13   : > { %p395_p3 = scmp.eq.s32.totalorder %s2494_s25, 1  ;;  %p400_p4 = scmp.ne.s32.totalorder %s2370_s22, %s2366_s21 }
  0x14   : > { %s2510_s30 = scalar_select %p36_p1, %s2374_s23, %s38_s28  }
  0x15   : > { %p2512_p5 = por %p46_p2, %p45_p0  ;;  %p2516_p6 = por %p395_p3, %p45_p0 }
  0x16   : > { %2886 = sst [smem:[#allocation15_spill]] %s2510_s30  ;;  %p401_p7 = scmp.eq.s32.totalorder %s1773_s26, 1 }
  0x17   : > { %s2887_s0 = scalar_select %p2512_p5, 1, 0 }
  0x18   : > { %s2888_s17 = scalar_select %p2516_p6, 1, 0 }
  0x19   : > { %p1774_p8 = scmp.ge.s32.totalorder %s2378_s24, 1  ;;  %p408_p9 = scmp.lt.s32.totalorder %s2378_s24, 3 }
  0x1a   : > { %2889 = sst [smem:[#allocation16_spill]] %s2888_s17  ;;  %p2522_p10 = por %p401_p7, %p400_p4 }
  0x1b   : > { %p2872_p11 = scmp.eq.s32.totalorder %s2494_s25, 0  ;;  %p2527_p12 = pnand %p1774_p8, %p408_p9 }
  0x1c   : > { %s2890_s18 = scalar_select %p2522_p10, 1, 0 }
  0x1d   : > { %s2892_s19 = scalar_select %p2527_p12, 1, 0 }
  0x1e   : > { %2891 = sst [smem:[#allocation17_spill]] %s2890_s18  ;;  %p2115_p13 = pneg %p2527_p12 }
  0x1f   : > { %s2380_s20 = smov [#allocation6]   ;;  %s2381_s29 = smov [#allocation3]  }
  0x20   : > { %s442_s28 = sshll.u32 %s2380_s20, 4  ;;  %p2537_p0 = pnand %p2872_p11, %p2115_p13  ;;  %s2533_s28 = int_to_ptr.vmem [resolvable:$true] %s442_s28 }
  0x21   : > { %s420_s30 = sshll.u32 %s2381_s29, 4  ;;  %s2382_s27 = smov [#allocation8]   ;;  %s2541_s30 = int_to_ptr.vmem [resolvable:$true] %s420_s30 }
  0x22   : > { %s2543_s18 = sshll.u32 %s2382_s27, 4  ;;  %s2224_s17 = scalar_lea.hbm %s2854_s6, 1024  ;;  %s462_s18 = int_to_ptr.vmem [resolvable:$true] %s2543_s18 }
  0x23   : > { %p2225_p1 = scmp.ne.s32.totalorder %s2854_s6, %s2224_s17  ;;  %p2553_p2 = pneg %p2537_p0 }
  0x24   : > { %p2231_p7 = scmp.lt.u32.totalorder %s2224_s17, %s2854_s6 }
  0x25   : > { %p2227_p3 = pnand %p2553_p2, %p2225_p1 }
  0x27   : > { %p2228_p4 = pneg %p2227_p3 }
  0x29   : > { %p2233_p8 = pnand %p2231_p7, %p2228_p4 }
  0x2b   : > { %2236 = shalt.err (!%p2233_p8)
}
  0x2c   : > { %s2237_s15 = scalar_lea.vmem %s2533_s28, 1024  ;;  %p2245_p10 = scmp.lt.s32.totalorder %s2533_s28, %s2533_s28 }
  0x2d   : > { %p2238_p9 = scmp.ne.s32.totalorder %s2533_s28, %s2237_s15  ;;  %p2246_p6 = scmp.lt.s32.totalorder %s2237_s15, %s2237_s15 }
  0x2f   : > { %p2240_p13 = pnand %p2238_p9, %p2553_p2  ;;  %p2247_p1 = por %p2246_p6, %p2245_p10 }
  0x31   : > { %p2241_p11 = pneg %p2240_p13 }
  0x33   : > { %p2248_p3 = pnand %p2247_p1, %p2241_p11 }
  0x35   : > { %2251 = shalt.err (!%p2248_p3)
}
  0x36   : > { %s2383_s16 = smov 64   ;;  %s2384_s21 = smov 4  }
  0x37   : > { %2121 = dma.hbm_to_vmem [thread:$0]  (!%p2537_p0), %s2854_s6, 1024, %s2533_s28, [#allocation7], %s2383_s16, %s2383_s16, %s2384_s21  }
  0x38   : > { %s2252_s15 = scalar_lea.hbm %s2850_s2, 128 }
  0x39   : > { %p2253_p6 = scmp.ne.s32.totalorder %s2850_s2, %s2252_s15  ;;  %p2259_p4 = scmp.lt.u32.totalorder %s2252_s15, %s2850_s2 }
  0x3b   : > { %p2255_p10 = pnand %p2253_p6, %p2553_p2 }
  0x3d   : > { %p2256_p11 = pneg %p2255_p10 }
  0x3f   : > { %p2261_p7 = pnand %p2259_p4, %p2256_p11 }
  0x41   : > { %2264 = shalt.err (!%p2261_p7)
}
  0x42   : > { %s2265_s28 = scalar_lea.vmem %s2541_s30, 128  ;;  %p2273_p1 = scmp.lt.s32.totalorder %s2541_s30, %s2541_s30 }
  0x43   : > { %p2266_p8 = scmp.ne.s32.totalorder %s2541_s30, %s2265_s28  ;;  %p2274_p3 = scmp.lt.s32.totalorder %s2265_s28, %s2265_s28 }
  0x45   : > { %p2268_p9 = pnand %p2266_p8, %p2553_p2  ;;  %p2275_p6 = por %p2274_p3, %p2273_p1 }
  0x47   : > { %p2269_p13 = pneg %p2268_p9 }
  0x49   : > { %p2276_p10 = pnand %p2275_p6, %p2269_p13 }
  0x4b   : > { %2279 = shalt.err (!%p2276_p10)
}
  0x4c   : > { %2118 = dma.hbm_to_vmem [thread:$0]  (!%p2537_p0), %s2850_s2, 128, %s2541_s30, [#allocation4], %s2383_s16, %s2383_s16, %s2384_s21  }
  0x4d   : > { %s2280_s17 = scalar_lea.hbm %s2857_s9, 1024 }
  0x4e   : > { %p2281_p11 = scmp.ne.s32.totalorder %s2857_s9, %s2280_s17  ;;  %p2287_p8 = scmp.lt.u32.totalorder %s2280_s17, %s2857_s9 }
  0x50   : > { %p2283_p4 = pnand %p2281_p11, %p2553_p2 }
  0x52   : > { %p2284_p7 = pneg %p2283_p4 }
  0x54   : > { %p2289_p9 = pnand %p2287_p8, %p2284_p7 }
  0x56   : > { %2292 = shalt.err (!%p2289_p9)
}
  0x57   : > { %s2293_s28 = scalar_lea.vmem %s462_s18, 1024  ;;  %p2301_p6 = scmp.lt.s32.totalorder %s462_s18, %s462_s18 }
  0x58   : > { %p2294_p13 = scmp.ne.s32.totalorder %s462_s18, %s2293_s28  ;;  %p2302_p10 = scmp.lt.s32.totalorder %s2293_s28, %s2293_s28 }
  0x5a   : > { %p2296_p1 = pnand %p2294_p13, %p2553_p2  ;;  %p2303_p12 = por %p2302_p10, %p2301_p6 }
  0x5c   : > { %p2297_p3 = pneg %p2296_p1 }
  0x5e   : > { %p2304_p5 = pnand %p2303_p12, %p2297_p3 }
  0x60   : > { %2307 = shalt.err (!%p2304_p5)
}
  0x61   : > { %2124 = dma.hbm_to_vmem [thread:$0]  (!%p2537_p0), %s2857_s9, 1024, %s462_s18, [#allocation7], %s2383_s16, %s2383_s16, %s2384_s21  }
  0x62   : > { %p1778_p11 = scmp.ge.s32.totalorder %s2378_s24, 2 }
  0x63   : > { %p2895_p2 = scmp.ne.s32.totalorder (!%p1778_p11), %s2887_s0, 0 }
  0x64   : > { %489 = sbr.rel (%p1778_p11) target bundleno = 121 (0x79), region = 72 }
  0x6b   : > { %492 = sbr.rel (!%p2895_p2) target bundleno = 121 (0x79), region = 76  ;;  %s494_s14 = sand.u32 (%p2895_p2), 1, %s2374_s23  }
  0x6c   : > { %s1867_s7 = sshll.u32 (%p2895_p2), %s2378_s24, 5  ;;  %s1779_s26 = sshll.u32 (%p2895_p2), %s494_s14, 6 }
  0x6d   : > { %s2896_s17 = sld [smem:[#allocation18_spill]] (%p2895_p2)  ;;  %s496_s18 = scalar_lea.vmem (%p2895_p2), [#allocation2], %s1779_s26 }
  0x73   : > { %s499_s20 = scalar_lea.vmem %s2896_s17, %s1867_s7 }
  0x74   : > { %v541_v0 = vld [vmem:[%s499_s20] sm:$0xff]  ;;  %v543_v1 = vld [vmem:[%s499_s20 + $0x8] sm:$0xff]  ;;  %v545_v2 = vld [vmem:[%s499_s20 + $0x10] sm:$0xff] }
  0x75   : > { %542 = vst [vmem:[%s496_s18] sm:$0xff] %v541_v0  ;;  %544 = vst [vmem:[%s496_s18 + $0x8] sm:$0xff] %v543_v1  ;;  %v547_v3 = vld [vmem:[%s499_s20 + $0x18] sm:$0xff]  ;;  %v549_v4 = vld [vmem:[%s499_s20 + $0x40] sm:$0xff] }
  0x76   : > { %546 = vst [vmem:[%s496_s18 + $0x10] sm:$0xff] %v545_v2  ;;  %v551_v5 = vld [vmem:[%s499_s20 + $0x48] sm:$0xff]  ;;  %548 = vst [vmem:[%s496_s18 + $0x18] sm:$0xff] %v547_v3  ;;  %v553_v6 = vld [vmem:[%s499_s20 + $0x50] sm:$0xff] }
  0x77   : > { %550 = vst [vmem:[%s496_s18 + $0x20] sm:$0xff] %v549_v4  ;;  %552 = vst [vmem:[%s496_s18 + $0x28] sm:$0xff] %v551_v5  ;;  %v555_v7 = vld [vmem:[%s499_s20 + $0x58] sm:$0xff] }
  0x78   : > { %554 = vst [vmem:[%s496_s18 + $0x30] sm:$0xff] %v553_v6  ;;  %556 = vst [vmem:[%s496_s18 + $0x38] sm:$0xff] %v555_v7 }
  0x79 PF: > { %p2897_p5 = scmp.ne.s32.totalorder %s2892_s19, 0 }
  0x7a   : > { %s2638_s0 = sand.u32 (!%p2897_p5), 1, %s2370_s22   ;;  %p2898_p12 = scmp.eq.s32.totalorder (!%p2897_p5), %s2494_s25, 0 }
  0x7b   : > { %574 = sbr.rel (%p2897_p5) target bundleno = 1340 (0x53c), region = 118  ;;  %s1783_s16 = sshll.u32 (!%p2897_p5), %s2638_s0, 6 }
  0x7c   : > { %s579_s21 = scalar_lea.vmem (!%p2897_p5), [#allocation2], %s1783_s16 }
  0x82   : > { %2353 = dma.done.wait (%p2898_p12), [#allocation4], 128   ;;  %p2899_p0 = pmov %p2898_p12 }
  0x84   : > { %2355 = vsyncadd (%p2899_p0), [#allocation4], 4294967168  ;;  %p2900_p4 = pmov %p2899_p0 }
  0x85   : > { %p2901_p7 = pmov %p2899_p0 }
  0x86   : > { %2357 = dma.done.wait (%p2900_p4), [#allocation7], 2048  }
  0x87   : > { %2359 = vsyncadd (%p2901_p7), [#allocation7], 4294965248  ;;  %v2175_v8 = vld [vmem:[#allocation3] sm:$0xff]   ;;  %v653_v10 = vld [vmem:[%s579_s21 + $0x8] sm:$0xff]  ;;  %vm679_vm0 = vcmask 130048   ;;  %s2099_s28 = smul.u32 48, %s2638_s0 }
  0x88   : > { %v652_v9 = vld [vmem:[%s579_s21] sm:$0xff]  ;;  %v654_v11 = vld [vmem:[%s579_s21 + $0x10] sm:$0xff]  ;;  %1950 = vmatprep.subr.bf16.mxu0 %v2175_v8  ;;  %v655_v13 = vld [vmem:[%s579_s21 + $0x18] sm:$0xff]  ;;  %vm1340_vm1 = vcmask 1043456   ;;  %s1787_s1 = sshll.u32 %s2494_s25, 2  ;;  %s2902_s26 = sld [smem:[#allocation21_spill]] }
  0x89   : > { %v660_v12 = vpack.c.bf16 %v653_v10, %v652_v9  ;;  %v656_v14 = vld [vmem:[%s579_s21 + $0x20] sm:$0xff]  ;;  %v657_v15 = vld [vmem:[%s579_s21 + $0x28] sm:$0xff]  ;;  %1951 = vmatpush3.bf16.msra.mxu0 %v2175_v8  ;;  %v661_v16 = vpack.c.bf16 %v655_v13, %v654_v11  ;;  %v658_v20 = vld [vmem:[%s579_s21 + $0x30] sm:$0xff]  ;;  %s2715_s30 = scalar_lea.vmem [#allocation9], %s2099_s28  ;;  %p645_p8 = scmp.lt.s32.totalorder %s1787_s1, 7  ;;  %vm1333_vm2 = vcmask 64512  }
  0x8a   : > { %v662_v17 = vpack.c.bf16 %v657_v15, %v656_v14  ;;  %v2176_v18 = vld [vmem:[%s2851_s3] sm:$0xff]   ;;  %v2177_v19 = vld [vmem:[%s2851_s3 + $0x8] sm:$0xff]   ;;  %v659_v21 = vld [vmem:[%s579_s21 + $0x38] sm:$0xff]  ;;  %s2903_s20 = sld [smem:[#allocation19_spill]]  ;;  %s2904_s19 = sld [smem:[#allocation20_spill]] }
  0x8b   : > { %1952 = vmatprep.mubr.msk.bf16.mxu0 %vm679_vm0, %v660_v12  ;;  %1960 = vmatprep.subr.bf16.mxu1 %v2176_v18  ;;  %v2178_v22 = vld [vmem:[%s2851_s3 + $0x10] sm:$0xff]   ;;  %v663_v23 = vpack.c.bf16 %v659_v21, %v658_v20  ;;  %v2179_v24 = vld [vmem:[%s2851_s3 + $0x18] sm:$0xff]   ;;  %v2180_v25 = vld [vmem:[%s2851_s3 + $0x20] sm:$0xff]   ;;  %s2920_s1 = smov (!%p645_p8, %s1787_s1), 7  ;;  %s2905_s27 = sld [smem:[#allocation22_spill]] }
  0x8c   : > { %1953 = vmatmul.mubr.msk.bf16.vlgmr.msra.gmra.mrb[0].mxu0 %vm679_vm0, %v661_v16  ;;  %1961 = vmatpush3.bf16.msra.mxu1 %v2176_v18  ;;  %v2181_v26 = vld [vmem:[%s2851_s3 + $0x28] sm:$0xff]   ;;  %v2182_v27 = vld [vmem:[%s2851_s3 + $0x30] sm:$0xff]   ;;  %v2183_v28 = vld [vmem:[%s2851_s3 + $0x38] sm:$0xff]   ;;  %s1788_s12 = sshll.u32 %s2920_s1, 3  ;;  %s2906_s1 = sld [smem:[#allocation23_spill]] }
  0x8d   : > { %1956 = vmatprep.mubr.msk.bf16.mxu0 %vm679_vm0, %v662_v17  ;;  %1962 = vmatprep.subr.bf16.mxu1 %v2177_v19  ;;  %v2184_v29 = vld [vmem:[%s2853_s5] sm:$0xff]   ;;  %v2185_v30 = vld [vmem:[%s2853_s5 + $0x8] sm:$0xff]   ;;  %v2186_v31 = vld [vmem:[%s2853_s5 + $0x10] sm:$0xff]   ;;  %s1662_s13 = sshll.u32 %s2715_s30, 4  ;;  %s2908_s17 = sld [smem:[#allocation16_spill]]  ;;  %s2801_s13 = int_to_ptr.vmem [resolvable:$true] %s1662_s13 }
  0x8e   : > { %1984 = vmatprep.subr.bf16.mxu0 %v2184_v29  ;;  %v2187_v32 = vld [vmem:[%s2853_s5 + $0x18] sm:$0xff]   ;;  %v1789_v33 = vld [vmem:[%s2858_s10] ss:$0 sm:$0xff]  ;;  %v2189_v63 = vld [vmem:[%s2853_s5 + $0x28] sm:$0xff]   ;;  %s2909_s16 = sld [smem:[#allocation25_spill]]  ;;  %s2308_s29 = scalar_lea.vmem %s2801_s13, 768 }
  0x8f   : > { %1985 = vmatpush3.bf16.msra.mxu0 %v2184_v29  ;;  %v2188_v62 = vld [vmem:[%s2853_s5 + $0x20] sm:$0xff]   ;;  %v2190_v0 = vld [vmem:[%s2853_s5 + $0x30] sm:$0xff]   ;;  %v2191_v1 = vld [vmem:[%s2853_s5 + $0x38] sm:$0xff]   ;;  %p2309_p9 = scmp.ne.s32.totalorder %s2801_s13, %s2308_s29 }
  0x90   : > { %1963 = vmatpush3.bf16.msra.mxu1 %v2177_v19  ;;  %1986 = vmatprep.subr.bf16.mxu0 %v2185_v30  ;;  %v2192_v2 = vld [vmem:[%s2852_s4] sm:$0xff]   ;;  %v2200_v3 = vld [vmem:[#allocation6] sm:$0xff]   ;;  %v2201_v4 = vld [vmem:[#allocation6 + $0x8] sm:$0xff]   ;;  %s648_s18 = scalar_lea.vmem %s2903_s20, %s1788_s12  ;;  %s2100_s12 = smul.u32 768, %s2494_s25 }
  0x91   : > { %1964 = vmatprep.subr.bf16.mxu1 %v2178_v22  ;;  %v2202_v5 = vld [vmem:[#allocation6 + $0x10] sm:$0xff]   ;;  %v2203_v6 = vld [vmem:[#allocation6 + $0x18] sm:$0xff]   ;;  %v2204_v7 = vld [vmem:[#allocation6 + $0x20] sm:$0xff]   ;;  %s1648_s25 = scalar_lea.sflag [#allocation5], %s2638_s0 }
  0x92   : > { %v2205_v8 = vld [vmem:[#allocation6 + $0x28] sm:$0xff]   ;;  %v1795_v10 = vld [vmem:[%s2859_s11] ss:$0 sm:$0xff] }
  0x93   : > { %1987 = vmatpush3.bf16.msra.mxu0 %v2185_v30  ;;  %p2910_p13 = scmp.ne.s32.totalorder %s2908_s17, 0 }
  0x94   : > { %1957 = vmatmul.mubr.msk.bf16.gmra.mrb[4].mxu0 %vm679_vm0, %v663_v23  ;;  %1965 = vmatpush3.bf16.msra.mxu1 %v2178_v22  ;;  %s2799_s21 = scalar_lea.hbm %s2909_s16, %s2100_s12 }
  0x95   : > { %1966 = vmatprep.subr.bf16.mxu1 %v2179_v24  ;;  %1988 = vmatprep.subr.bf16.mxu0 %v2186_v31  ;;  %p2310_p1 = pnand %p2309_p9, %p2910_p13 }
  0x97   : > { %1989 = vmatpush3.bf16.msra.mxu0 %v2186_v31  ;;  %p2311_p3 = pneg %p2310_p1 }
  0x98   : > { %1967 = vmatpush3.bf16.msra.mxu1 %v2179_v24  ;;  %1990 = vmatprep.subr.bf16.mxu0 %v2187_v32 }
  0x99   : > { %1968 = vmatprep.subr.bf16.mxu1 %v2180_v25 }
  0x9b   : > { %1991 = vmatpush3.bf16.msra.mxu0 %v2187_v32 }
  0x9c   : > { %1969 = vmatpush3.bf16.msra.mxu1 %v2180_v25  ;;  %1992 = vmatprep.subr.bf16.mxu0 %v2188_v62 }
  0x9d   : > { %1970 = vmatprep.subr.bf16.mxu1 %v2181_v26 }
  0x9f   : > { %1993 = vmatpush3.bf16.msra.mxu0 %v2188_v62 }
  0xa0   : > { %1971 = vmatpush3.bf16.msra.mxu1 %v2181_v26  ;;  %1994 = vmatprep.subr.bf16.mxu0 %v2189_v63 }
  0xa1   : > { %1972 = vmatprep.subr.bf16.mxu1 %v2182_v27 }
  0xa3   : > { %1995 = vmatpush3.bf16.msra.mxu0 %v2189_v63  ;;  %v2208_v63 = vld [vmem:[%s2904_s19] sm:$0xff]  }
  0xa4   : > { %1973 = vmatpush3.bf16.msra.mxu1 %v2182_v27  ;;  %1996 = vmatprep.subr.bf16.mxu0 %v2190_v0 }
  0xa5   : > { %1974 = vmatprep.subr.bf16.mxu1 %v2183_v28 }
  0xa7   : > { %1997 = vmatpush3.bf16.msra.mxu0 %v2190_v0  ;;  %v929_v0 = vld [vmem:[%s648_s18 + $0x10] sm:$0xff] }
  0xa8   : > { %1975 = vmatpush3.bf16.msra.mxu1 %v2183_v28  ;;  %1998 = vmatprep.subr.bf16.mxu0 %v2191_v1 }
  0xa9   : > { %2024 = vmatprep.subr.bf16.mxu1 %v2200_v3 }
  0xab   : > { %1999 = vmatpush3.bf16.msra.mxu0 %v2191_v1  ;;  %v930_v1 = vld [vmem:[%s648_s18 + $0x18] sm:$0xff] }
  0xac   : > { %2004 = vmatprep.subr.bf16.mxu0 %v2192_v2 }
 0x15f   : > { %v1954_v34 = vpop.f32.mrb[0].mxu0 }
 0x160   : > { %v735_v35 = vadd.f32 %v1954_v34, %v1789_v33  ;;  %v726_v36 = vpop.f32.mrb[1].mxu0  ;;  %v2193_v34 = vld [vmem:[%s2852_s4 + $0x8] sm:$0xff]  }
 0x161   : > { %v727_v37 = vadd.f32 %v1789_v33, %v726_v36  ;;  %v1955_v38 = vpop.f32.mrb[2].mxu0  ;;  %v2195_v36 = vld [vmem:[%s2852_s4 + $0x18] sm:$0xff]  }
 0x162   : > { %v738_v39 = vadd.f32 %v1955_v38, %v1789_v33  ;;  %v729_v40 = vpop.f32.mrb[3].mxu0  ;;  %v759_v42 = vmax.f32 %v735_v35, 0.0  ;;  %v2194_v35 = vld [vmem:[%s2852_s4 + $0x10] sm:$0xff]   ;;  %v2197_v38 = vld [vmem:[%s2852_s4 + $0x28] sm:$0xff]  }
 0x163   : > { %v730_v41 = vadd.f32 %v1789_v33, %v729_v40  ;;  %v757_v44 = vmax.f32 %v727_v37, 0.0  ;;  %v2196_v37 = vld [vmem:[%s2852_s4 + $0x20] sm:$0xff]   ;;  %v2199_v40 = vld [vmem:[%s2852_s4 + $0x38] sm:$0xff]  }
 0x164   : > { %v760_v43 = vmax.f32 %v738_v39, 0.0  ;;  %v2198_v39 = vld [vmem:[%s2852_s4 + $0x30] sm:$0xff]  }
 0x165   : > { %v758_v45 = vmax.f32 %v730_v41, 0.0  ;;  %v2206_v41 = vld [vmem:[#allocation6 + $0x30] sm:$0xff]  }
 0x166   : > { %v766_v46 = vpack.c.bf16 %v760_v43, %v759_v42  ;;  %v2207_v42 = vld [vmem:[#allocation6 + $0x38] sm:$0xff]  }
 0x167   : > { %v1958_v47 = vpop.f32.mrb[4].mxu0  ;;  %v765_v48 = vpack.c.bf16 %v758_v45, %v757_v44  ;;  %v1332_v43 = vld [vmem:[%s2856_s8] sm:$0xf] }
 0x168   : > { %v751_v49 = vadd.f32 %v1958_v47, %v1789_v33  ;;  %v742_v50 = vpop.f32.mrb[5].mxu0  ;;  %v1342_v44 = vsel %vm1340_vm1, %v1332_v43, 0  ;;  %v1824_v45 = vld [vmem:[%s2902_s26] ss:$0 sm:$0xff]  ;;  %s2907_s26 = sld [smem:[#allocation24_spill]] }
 0x169   : > { %v743_v51 = vadd.f32 %v1789_v33, %v742_v50  ;;  %v1959_v52 = vpop.f32.mrb[6].mxu0  ;;  %1976 = vmatprep.mubr.bf16.mxu1 %v765_v48 }
 0x16a   : > { %v754_v53 = vadd.f32 %v1959_v52, %v1789_v33  ;;  %v745_v54 = vpop.f32.mrb[7].mxu0  ;;  %1977 = vmatmul.mubr.bf16.vlgmr.msra.gmra.mrb[0].mxu1 %v766_v46  ;;  %v763_v56 = vmax.f32 %v751_v49, 0.0 }
 0x16b   : > { %v746_v55 = vadd.f32 %v1789_v33, %v745_v54  ;;  %v761_v58 = vmax.f32 %v743_v51, 0.0  ;;  %2025 = vmatpush3.bf16.msra.mxu1 %v2200_v3  ;;  %v2209_v3 = vld [vmem:[%s2904_s19 + $0x8] sm:$0xff]  }
 0x16c   : > { %v764_v57 = vmax.f32 %v754_v53, 0.0  ;;  %2026 = vmatprep.subr.bf16.mxu1 %v2201_v4 }
 0x16d   : > { %v762_v59 = vmax.f32 %v746_v55, 0.0 }
 0x16e   : > { %v768_v60 = vpack.c.bf16 %v764_v57, %v763_v56  ;;  %v927_v56 = vld [vmem:[%s648_s18] sm:$0xff]  ;;  %v928_v57 = vld [vmem:[%s648_s18 + $0x8] sm:$0xff] }
 0x16f   : > { %v767_v61 = vpack.c.bf16 %v762_v59, %v761_v58  ;;  %2027 = vmatpush3.bf16.msra.mxu1 %v2201_v4  ;;  %v931_v62 = vpack.c.bf16 %v928_v57, %v927_v56  ;;  %v2210_v4 = vld [vmem:[%s2904_s19 + $0x10] sm:$0xff]  }
 0x170   : > { %2028 = vmatprep.subr.bf16.mxu1 %v2202_v5 }
 0x171   : > { %1980 = vmatprep.mubr.bf16.mxu1 %v767_v61 }
 0x172   : > { %1981 = vmatmul.mubr.bf16.gmra.mrb[4].mxu1 %v768_v60 }
 0x173   : > { %2029 = vmatpush3.bf16.msra.mxu1 %v2202_v5  ;;  %v2211_v5 = vld [vmem:[%s2904_s19 + $0x18] sm:$0xff]  }
 0x174   : > { %2030 = vmatprep.subr.bf16.mxu1 %v2203_v6 }
 0x177   : > { %2031 = vmatpush3.bf16.msra.mxu1 %v2203_v6  ;;  %v2212_v6 = vld [vmem:[%s2904_s19 + $0x20] sm:$0xff]  }
 0x178   : > { %2032 = vmatprep.subr.bf16.mxu1 %v2204_v7 }
 0x17b   : > { %2033 = vmatpush3.bf16.msra.mxu1 %v2204_v7  ;;  %v2213_v7 = vld [vmem:[%s2904_s19 + $0x28] sm:$0xff]  }
 0x17c   : > { %2034 = vmatprep.subr.bf16.mxu1 %v2205_v8 }
 0x17f   : > { %2035 = vmatpush3.bf16.msra.mxu1 %v2205_v8  ;;  %v2214_v8 = vld [vmem:[%s2904_s19 + $0x30] sm:$0xff]  }
 0x180   : > { %2036 = vmatprep.subr.bf16.mxu1 %v2206_v41 }
 0x183   : > { %2037 = vmatpush3.bf16.msra.mxu1 %v2206_v41 }
 0x184   : > { %2038 = vmatprep.subr.bf16.mxu1 %v2207_v42 }
 0x187   : > { %2039 = vmatpush3.bf16.msra.mxu1 %v2207_v42 }
 0x188   : > { %2098 = vmatprep.subr.msk.bf16.mxu1 %vm1340_vm1, %v1332_v43 }
 0x23d   : > { %v1978_v9 = vpop.f32.mrb[0].mxu1 }
 0x23e   : > { %v874_v11 = vpop.f32.mrb[1].mxu1  ;;  %v883_v13 = vadd.f32 %v1978_v9, %v1795_v10  ;;  %v2215_v9 = vld [vmem:[%s2904_s19 + $0x38] sm:$0xff]  }
 0x23f   : > { %v1979_v12 = vpop.f32.mrb[2].mxu1  ;;  %v875_v16 = vadd.f32 %v1795_v10, %v874_v11  ;;  %v2217_v11 = vld [vmem:[#allocation8 + $0x8] sm:$0xff]  }
 0x240   : > { %v886_v14 = vadd.f32 %v1979_v12, %v1795_v10  ;;  %v877_v15 = vpop.f32.mrb[3].mxu1  ;;  %v2218_v12 = vld [vmem:[#allocation8 + $0x10] sm:$0xff]  }
 0x241   : > { %v878_v17 = vadd.f32 %v1795_v10, %v877_v15  ;;  %v2221_v15 = vld [vmem:[#allocation8 + $0x28] sm:$0xff]  }
 0x242   : > { %v2710_v18 = vpack.c.bf16 %v886_v14, %v883_v13  ;;  %v2219_v13 = vld [vmem:[#allocation8 + $0x18] sm:$0xff]   ;;  %v2220_v14 = vld [vmem:[#allocation8 + $0x20] sm:$0xff]  }
 0x243   : > { %v2712_v19 = vpack.c.bf16 %v878_v17, %v875_v16  ;;  %v2222_v16 = vld [vmem:[#allocation8 + $0x30] sm:$0xff]   ;;  %v2223_v17 = vld [vmem:[#allocation8 + $0x38] sm:$0xff]  }
 0x245   : > { %v1982_v20 = vpop.f32.mrb[4].mxu1 }
 0x246   : > { %v899_v21 = vadd.f32 %v1982_v20, %v1795_v10  ;;  %v890_v22 = vpop.f32.mrb[5].mxu1 }
 0x247   : > { %v891_v23 = vadd.f32 %v1795_v10, %v890_v22  ;;  %v1983_v24 = vpop.f32.mrb[6].mxu1 }
 0x248   : > { %v1870_v25 = vpack.c.bf16 %v899_v21, %v899_v21  ;;  %v902_v26 = vadd.f32 %v1983_v24, %v1795_v10  ;;  %v893_v27 = vpop.f32.mrb[7].mxu1 }
 0x249   : > { %v1868_v28 = vpack.c.bf16 %v891_v23, %v891_v23  ;;  %v894_v29 = vadd.f32 %v1795_v10, %v893_v27  ;;  %v2216_v10 = vld [vmem:[#allocation8] sm:$0xff]  }
 0x24a   : > { %923 = vst [vmem:[%s2715_s30 + $0x20] sm:$0xf] %v1870_v25  ;;  %v906_v30 = vpack.c.bf16 %v902_v26, %v899_v21  ;;  %v1871_v31 = vpack.c.bf16 %v902_v26, %v902_v26 }
 0x24b   : > { %921 = vst [vmem:[%s2715_s30 + $0x8] sm:$0xf] %v1868_v28  ;;  %v905_v32 = vpack.c.bf16 %v894_v29, %v891_v23  ;;  %v1869_v33 = vpack.c.bf16 %v894_v29, %v894_v29 }
 0x24c   : > { %924 = vst [vmem:[%s2715_s30 + $0x2c] sm:$0xf] %v1871_v31  ;;  %v1848_v31 = vld [vmem:[%s2906_s1] ss:$0 sm:$0xff] }
 0x24d   : > { %922 = vst [vmem:[%s2715_s30 + $0x14] sm:$0xf] %v1869_v33  ;;  %2000 = vmatprep.mubr.bf16.mxu0 %v905_v32 }
 0x24e   : > { %2001 = vmatmul.mubr.bf16.vlgmr.msra.gmra.mrb[8].mxu0 %v906_v30 }
 0x24f   : > { %2005 = vmatpush3.bf16.msra.mxu0 %v2192_v2  ;;  %2020 = vmatprep.mubr.bf16.mxu0 %v2712_v19  ;;  %v932_v2 = vpack.c.bf16 %v930_v1, %v929_v0 }
 0x250   : > { %2006 = vmatprep.subr.bf16.mxu0 %v2193_v34 }
 0x253   : > { %2007 = vmatpush3.bf16.msra.mxu0 %v2193_v34 }
 0x254   : > { %2008 = vmatprep.subr.bf16.mxu0 %v2194_v35 }
 0x257   : > { %2009 = vmatpush3.bf16.msra.mxu0 %v2194_v35 }
 0x258   : > { %2010 = vmatprep.subr.bf16.mxu0 %v2195_v36 }
 0x25b   : > { %2011 = vmatpush3.bf16.msra.mxu0 %v2195_v36 }
 0x25c   : > { %2012 = vmatprep.subr.bf16.mxu0 %v2196_v37 }
 0x25f   : > { %2013 = vmatpush3.bf16.msra.mxu0 %v2196_v37 }
 0x260   : > { %2014 = vmatprep.subr.bf16.mxu0 %v2197_v38 }
 0x263   : > { %2015 = vmatpush3.bf16.msra.mxu0 %v2197_v38 }
 0x264   : > { %2016 = vmatprep.subr.bf16.mxu0 %v2198_v39 }
 0x267   : > { %2017 = vmatpush3.bf16.msra.mxu0 %v2198_v39 }
 0x268   : > { %2018 = vmatprep.subr.bf16.mxu0 %v2199_v40 }
 0x26b   : > { %2019 = vmatpush3.bf16.msra.mxu0 %v2199_v40 }
 0x26c   : > { %2070 = vmatprep.subr.bf16.mxu0 %v2216_v10 }
 0x26e   : > { %2021 = vmatmul.mubr.bf16.vlgmr.msra.gmra.mrb[8].mxu0 %v2710_v18 }
 0x26f   : > { %2071 = vmatpush3.bf16.msra.mxu0 %v2216_v10 }
 0x270   : > { %2072 = vmatprep.subr.bf16.mxu0 %v2217_v11 }
 0x273   : > { %2073 = vmatpush3.bf16.msra.mxu0 %v2217_v11 }
 0x274   : > { %2074 = vmatprep.subr.bf16.mxu0 %v2218_v12 }
 0x277   : > { %2075 = vmatpush3.bf16.msra.mxu0 %v2218_v12 }
 0x278   : > { %2076 = vmatprep.subr.bf16.mxu0 %v2219_v13 }
 0x27b   : > { %2077 = vmatpush3.bf16.msra.mxu0 %v2219_v13 }
 0x27c   : > { %2078 = vmatprep.subr.bf16.mxu0 %v2220_v14 }
 0x27f   : > { %2079 = vmatpush3.bf16.msra.mxu0 %v2220_v14 }
 0x280   : > { %2080 = vmatprep.subr.bf16.mxu0 %v2221_v15 }
 0x283   : > { %2081 = vmatpush3.bf16.msra.mxu0 %v2221_v15 }
 0x284   : > { %2082 = vmatprep.subr.bf16.mxu0 %v2222_v16 }
 0x287   : > { %2083 = vmatpush3.bf16.msra.mxu0 %v2222_v16 }
 0x288   : > { %2084 = vmatprep.subr.bf16.mxu0 %v2223_v17 }
 0x28b   : > { %2085 = vmatpush3.bf16.msra.mxu0 %v2223_v17 }
 0x341   : > { %v2022_v46 = vpop.f32.mrb[8].mxu0 }
 0x342   : > { %v1168_v47 = vadd.f32 %v2022_v46, %v1824_v45  ;;  %v1144_v48 = vpop.f32.mrb[9].mxu0  ;;  %v1849_v46 = vld [vmem:[%s2907_s26] ss:$0 sm:$0xff] }
 0x343   : > { %v1166_v49 = vadd.f32 %v1824_v45, %v1144_v48  ;;  %v2023_v50 = vpop.f32.mrb[10].mxu0 }
 0x344   : > { %v1169_v51 = vadd.f32 %v2023_v50, %v1824_v45  ;;  %v1147_v52 = vpop.f32.mrb[11].mxu0  ;;  %v1172_v54 = vmax.f32 %v1168_v47, 0.0 }
 0x345   : > { %v1167_v53 = vadd.f32 %v1824_v45, %v1147_v52  ;;  %v1170_v58 = vmax.f32 %v1166_v49, 0.0 }
 0x346   : > { %v1173_v55 = vmax.f32 %v1169_v51, 0.0 }
 0x347   : > { %v1171_v59 = vmax.f32 %v1167_v53, 0.0 }
 0x348   : > { %v1175_v60 = vpack.c.bf16 %v1173_v55, %v1172_v54 }
 0x349   : > { %v1174_v61 = vpack.c.bf16 %v1171_v59, %v1170_v58 }
 0x34b   : > { %2040 = vmatprep.mubr.bf16.mxu1 %v1174_v61 }
 0x34c   : > { %2041 = vmatmul.mubr.bf16.vlgmr.msra.gmra.mrb[8].mxu1 %v1175_v60 }
 0x34d   : > { %2045 = vmatpush3.bf16.msra.mxu1 %v1342_v44  ;;  %2046 = vmatprep.mubr.msk.bf16.mxu1 %vm1333_vm2, %v931_v62 }
 0x34e   : > { %2050 = vmatprep.subr.bf16.mxu1 %v2208_v63 }
 0x354   : > { %2047 = vmatmul.mubr.msk.bf16.vlgmr.msra.gmra.mrb[12].mxu1 %vm1333_vm2, %v932_v2 }
 0x355   : > { %2051 = vmatpush3.bf16.msra.mxu1 %v2208_v63  ;;  %2066 = vmatprep.mubr.bf16.mxu1 %v2712_v19 }
 0x356   : > { %2052 = vmatprep.subr.bf16.mxu1 %v2209_v3 }
 0x359   : > { %2053 = vmatpush3.bf16.msra.mxu1 %v2209_v3 }
 0x35a   : > { %2054 = vmatprep.subr.bf16.mxu1 %v2210_v4 }
 0x35d   : > { %2055 = vmatpush3.bf16.msra.mxu1 %v2210_v4 }
 0x35e   : > { %2056 = vmatprep.subr.bf16.mxu1 %v2211_v5 }
 0x361   : > { %2057 = vmatpush3.bf16.msra.mxu1 %v2211_v5 }
 0x362   : > { %2058 = vmatprep.subr.bf16.mxu1 %v2212_v6 }
 0x365   : > { %2059 = vmatpush3.bf16.msra.mxu1 %v2212_v6 }
 0x366   : > { %2060 = vmatprep.subr.bf16.mxu1 %v2213_v7 }
 0x369   : > { %2061 = vmatpush3.bf16.msra.mxu1 %v2213_v7 }
 0x36a   : > { %2062 = vmatprep.subr.bf16.mxu1 %v2214_v8 }
 0x36d   : > { %2063 = vmatpush3.bf16.msra.mxu1 %v2214_v8 }
 0x36e   : > { %2064 = vmatprep.subr.bf16.mxu1 %v2215_v9 }
 0x371   : > { %2065 = vmatpush3.bf16.msra.mxu1 %v2215_v9 }
 0x374   : > { %2067 = vmatmul.mubr.bf16.vlgmr.msra.gmra.mrb[12].mxu1 %v2710_v18  ;;  %v1825_v18 = vld [vmem:[%s2905_s27] ss:$0 sm:$0xff]  ;;  %s2385_s27 = smov [#allocation9]  }
 0x375   : > { %s2312_s15 = sshll.u32 %s2385_s27, 4  ;;  %s2313_s15 = int_to_ptr.vmem [resolvable:$false] %s2312_s15 }
 0x376   : > { %s2314_s28 = scalar_lea.vmem %s2313_s15, 1536  ;;  %p2315_p6 = scmp.lt.s32.totalorder %s2801_s13, %s2313_s15 }
 0x377   : > { %p2316_p10 = scmp.lt.s32.totalorder %s2314_s28, %s2308_s29 }
 0x379   : > { %p2317_p2 = por %p2316_p10, %p2315_p6 }
 0x37b   : > { %p2318_p5 = pnand %p2317_p2, %p2311_p3 }
 0x41f   : > { %v2042_v19 = vpop.f32.mrb[8].mxu1 }
 0x420   : > { %v1290_v20 = vadd.f32 %v2042_v19, %v1825_v18  ;;  %v1281_v21 = vpop.f32.mrb[9].mxu1 }
 0x421   : > { %v1282_v22 = vadd.f32 %v1825_v18, %v1281_v21  ;;  %v2043_v23 = vpop.f32.mrb[10].mxu1 }
 0x422   : > { %v1874_v24 = vpack.c.bf16 %v1290_v20, %v1290_v20  ;;  %v1293_v25 = vadd.f32 %v2043_v23, %v1825_v18  ;;  %v1284_v26 = vpop.f32.mrb[11].mxu1 }
 0x423   : > { %v1872_v27 = vpack.c.bf16 %v1282_v22, %v1282_v22  ;;  %v1285_v28 = vadd.f32 %v1825_v18, %v1284_v26 }
 0x424   : > { %1314 = vst [vmem:[%s2715_s30 + $0x18] sm:$0xf] %v1874_v24  ;;  %v1875_v29 = vpack.c.bf16 %v1293_v25, %v1293_v25 }
 0x425   : > { %1312 = vst [vmem:[%s2715_s30] sm:$0xf] %v1872_v27  ;;  %v1873_v30 = vpack.c.bf16 %v1285_v28, %v1285_v28 }
 0x426   : > { %1315 = vst [vmem:[%s2715_s30 + $0x24] sm:$0xf] %v1875_v29 }
 0x427   : > { %1313 = vst [vmem:[%s2715_s30 + $0xc] sm:$0xf] %v1873_v30 }
 0x447   : > { %v2068_v32 = vpop.f32.mrb[12].mxu1 }
 0x448   : > { %v1499_v33 = vadd.f32 %v2068_v32, %v1848_v31  ;;  %v1475_v34 = vpop.f32.mrb[13].mxu1 }
 0x449   : > { %v1497_v35 = vadd.f32 %v1848_v31, %v1475_v34  ;;  %v2069_v36 = vpop.f32.mrb[14].mxu1 }
 0x44a   : > { %v1500_v37 = vadd.f32 %v2069_v36, %v1848_v31  ;;  %v1478_v38 = vpop.f32.mrb[15].mxu1  ;;  %v1503_v40 = vmax.f32 %v1499_v33, 0.0 }
 0x44b   : > { %v1498_v39 = vadd.f32 %v1848_v31, %v1478_v38  ;;  %v1501_v42 = vmax.f32 %v1497_v35, 0.0 }
 0x44c   : > { %v1504_v41 = vmax.f32 %v1500_v37, 0.0 }
 0x44d   : > { %v1502_v43 = vmax.f32 %v1498_v39, 0.0 }
 0x44e   : > { %v1506_v44 = vpack.c.bf16 %v1504_v41, %v1503_v40 }
 0x44f   : > { %v1505_v45 = vpack.c.bf16 %v1502_v43, %v1501_v42 }
 0x451   : > { %2086 = vmatprep.mubr.bf16.mxu0 %v1505_v45 }
 0x452   : > { %2087 = vmatmul.mubr.bf16.vlgmr.msra.gmra.mrb[12].mxu0 %v1506_v44 }
 0x525   : > { %v2088_v47 = vpop.f32.mrb[12].mxu0 }
 0x526   : > { %v1621_v48 = vadd.f32 %v2088_v47, %v1849_v46  ;;  %v1612_v49 = vpop.f32.mrb[13].mxu0 }
 0x527   : > { %v1613_v50 = vadd.f32 %v1849_v46, %v1612_v49  ;;  %v2089_v51 = vpop.f32.mrb[14].mxu0 }
 0x528   : > { %v1878_v52 = vpack.c.bf16 %v1621_v48, %v1621_v48  ;;  %v1624_v53 = vadd.f32 %v2089_v51, %v1849_v46  ;;  %v1615_v54 = vpop.f32.mrb[15].mxu0 }
 0x529   : > { %v1876_v55 = vpack.c.bf16 %v1613_v50, %v1613_v50  ;;  %v1616_v56 = vadd.f32 %v1849_v46, %v1615_v54 }
 0x52a   : > { %1645 = vst [vmem:[%s2715_s30 + $0x1c] sm:$0xf] %v1878_v52  ;;  %v1879_v57 = vpack.c.bf16 %v1624_v53, %v1624_v53 }
 0x52b   : > { %1643 = vst [vmem:[%s2715_s30 + $0x4] sm:$0xf] %v1876_v55  ;;  %v1877_v58 = vpack.c.bf16 %v1616_v56, %v1616_v56 }
 0x52c   : > { %1646 = vst [vmem:[%s2715_s30 + $0x28] sm:$0xf] %v1879_v57 }
 0x52d   : > { %1644 = vst [vmem:[%s2715_s30 + $0x10] sm:$0xf] %v1877_v58 }
 0x52e   : > { %2321 = shalt.err (!%p2318_p5)
}
 0x52f   : > { %s2322_s30 = scalar_lea.hbm %s2799_s21, 768  ;;  %s2326_s7 = scalar_lea.hbm %s2909_s16, 1536 }
 0x530   : > { %p2323_p12 = scmp.ne.s32.totalorder %s2799_s21, %s2322_s30  ;;  %p2327_p7 = scmp.lt.u32.totalorder %s2799_s21, %s2909_s16 }
 0x531   : > { %p2328_p8 = scmp.lt.u32.totalorder %s2326_s7, %s2322_s30  ;;  %p2330_p1 = scmp.lt.u32.totalorder %s2322_s30, %s2799_s21 }
 0x532   : > { %p2324_p0 = pnand %p2323_p12, %p2910_p13 }
 0x533   : > { %p2329_p9 = por %p2328_p8, %p2327_p7 }
 0x534   : > { %p2325_p4 = pneg %p2324_p0 }
 0x535   : > { %p2331_p3 = por %p2330_p1, %p2329_p9 }
 0x537   : > { %p2332_p6 = pnand %p2331_p3, %p2325_p4 }
 0x539   : > { %2335 = shalt.err (!%p2332_p6)
}
 0x53a   : > { %s2386_s20 = smov 192   ;;  %s2387_s18 = smov 12  }
 0x53b   : > { %2113 = dma.vmem_to_hbm [thread:$0]  (%p2910_p13), %s2801_s13, 768, %s2799_s21, %s1648_s25, %s2386_s20, %s2386_s20, %s2387_s18  }
 0x53c PF: > { %s2911_s29 = sld [smem:[#allocation13_spill]]  ;;  %s2912_s27 = sld [smem:[#allocation17_spill]] }
 0x542   : > { %s1677_s15 = sand.u32 1, %s2911_s29   ;;  %p2913_p10 = scmp.ne.s32.totalorder %s2912_s27, 0 }
 0x543   : > { %s1678_s28 = scalar_lea.sflag [#allocation5], %s1677_s15 }
 0x544   : > { %p2126_p2 = pnand %p1778_p11, %p2913_p10 }
 0x546   : > { %2361 = dma.done.wait (!%p2126_p2), %s1678_s28, 768  }
 0x547   : > { %2363 = vsyncadd (!%p2126_p2), %s1678_s28, 4294966528  ;;  %s2914_s24 = sld [smem:[#allocation14_spill]]  ;;  %s2915_s30 = sld [smem:[#allocation15_spill]] }
 0x548   : > { %s2916_s21 = smov %s2370_s22  ;;  %s2917_s22 = smov %s2374_s23 }
 0x54d   : > { %p28_p5 = scmp.ge.s32.totalorder %s2914_s24, 4   ;;  %s2918_s23 = smov %s2915_s30 }
 0x54f   :  { %30 = sbr.rel (!%p28_p5) target bundleno = 14 (0xe), region = 178 }
 0x556   :  { %1683 = vsyncpa [#allocation4], 1 }
 0x557   :  { %1685 = vsyncpa [#allocation4 + $0x1], 1 }
 0x558   :  { %1686 = vsyncpa [#allocation7], 1 }
 0x559   :  { %1687 = vsyncpa [#allocation5], 1 }
 0x55a   :  { %1689 = vsyncpa [#allocation5 + $0x1], 1 }

</bundles_post_ra>
